<compile_context>
chip_gen: v6e
topology: v6e:2x2x1
jax: 0.10.0
libtpu: 0.0.40
codegen_flags: <defaults>
</compile_context>

<pallas_src>
import numpy as np
import jax
import jax.numpy as jnp
from jax.experimental import pallas as pl
from jax.experimental.pallas import tpu as pltpu


# ----------------------------------------------------------------------------
# One-time weight preparation (run OUTSIDE jit, at init).
# ----------------------------------------------------------------------------
def prep_weights(w1, w2, w3, compute_dtype=jnp.float32):
    """torch-layout OIHW weights -> matmul-ready channel-major matrices."""
    O1, Ci, k1, _ = w1.shape
    O2, C1, k2, _ = w2.shape
    O3, C2, _, _ = w3.shape
    assert C1 == O1 and C2 == O2
    # conv1: (O1, Ci*k1*k1), contraction order (c, kh, kw)
    w1m = jnp.asarray(w1.reshape(O1, Ci * k1 * k1), compute_dtype)
    # conv2: one (O2, C1) matrix per kernel tap, tap order (kh, kw)
    w2t = jnp.asarray(jnp.transpose(w2, (2, 3, 0, 1)).reshape(k2 * k2, O2, C1),
                      compute_dtype)
    # conv3 (1x1): (O3, C2)
    w3m = jnp.asarray(w3.reshape(O3, C2), compute_dtype)
    return w1m, w2t, w3m


# ----------------------------------------------------------------------------
# Fused conv1+conv2+conv3 kernel (one grid step == one image).
# ----------------------------------------------------------------------------
def _make_fused_kernel(ntaps, compute_dtype):
    def kernel(p1t_ref, sel_ref, w1m_ref, w2t_ref, w3m_ref,
               o1_ref, o2_ref, o3_ref):
        # conv1: (O1, K1) @ (K1, P1) -> (O1, P1); channels on sublanes,
        # spatial (H1*W1) on the lane axis.  f32 accumulation on the MXU.
        p1t = p1t_ref[...].astype(compute_dtype)
        y1t = jnp.dot(w1m_ref[...], p1t, preferred_element_type=jnp.float32)
        y1c = y1t.astype(compute_dtype)

        # conv2: sum over the k2*k2 taps.  The spatial gather for each tap is a
        # tiny MXU matmul with a constant 0/1 selection matrix, so y1 stays in
        # VMEM/vregs and nothing is re-laid-out through HBM.
        y2t = None
        for tap in range(ntaps):
            g = jnp.dot(y1c, sel_ref[tap],
                        preferred_element_type=jnp.float32)         # (O1, P2)
            part = jnp.dot(w2t_ref[tap], g.astype(compute_dtype),
                           preferred_element_type=jnp.float32)      # (O2, P2)
            y2t = part if y2t is None else y2t + part

        # conv3: 1x1 conv == plain matmul: (O3, O2) @ (O2, P2).
        y3t = jnp.dot(w3m_ref[...], y2t.astype(compute_dtype),
                      preferred_element_type=jnp.float32)

        # Outputs are already channel-major (== NCHW with H*W flattened).
        o1_ref[...] = y1t
        o2_ref[...] = y2t
        o3_ref[...] = y3t

    return kernel


def net_forward(x_nchw, w1m, w2t, w3m, *, k1, k2):
    N, Ci, H, W = x_nchw.shape
    O1, K1 = w1m.shape
    ntaps, O2, _ = w2t.shape
    O3, _ = w3m.shape
    H1, W1 = H // k1, W // k1          # conv1 output spatial (floor == VALID)
    H2, W2 = H1 // k2, W1 // k2        # conv2 / conv3 output spatial
    P1, P2 = H1 * W1, H2 * W2
    assert K1 == Ci * k1 * k1 and ntaps == k2 * k2
    compute_dtype = w1m.dtype

    # conv1 im2col, emitted directly in channel-major orientation (K1, P1).
    # stride == kernel -> non-overlapping patches: a pure relayout of the same
    # bytes, fused by XLA with the (unavoidable) read of x.
    xc = x_nchw[:, :, :H1 * k1, :W1 * k1]
    p1t = (xc.reshape(N, Ci, H1, k1, W1, k1)
             .transpose(0, 1, 3, 5, 2, 4)
             .reshape(N, K1, P1))

    # Constant 0/1 selection matrices implementing the conv2 patch gather:
    # sel[tap, r, q] = 1 iff conv1-output pixel r feeds conv2 output pixel q at
    # kernel tap (kh, kw).  Built from static shapes -> baked in as a constant.
    sel_np = np.zeros((ntaps, P1, P2), np.float32)
    for kh in range(k2):
        for kw in range(k2):
            for h2 in range(H2):
                for w2_ in range(W2):
                    r = (k2 * h2 + kh) * W1 + (k2 * w2_ + kw)
                    sel_np[kh * k2 + kw, r, h2 * W2 + w2_] = 1.0
    sel = jnp.asarray(sel_np, compute_dtype)

    itemsize = w1m.dtype.itemsize
    flops = 2 * N * (O1 * K1 * P1
                     + ntaps * (O1 * P1 * P2 + O2 * O1 * P2)
                     + O3 * O2 * P2)
    bytes_accessed = (p1t.size * p1t.dtype.itemsize
                      + (w1m.size + w2t.size + w3m.size + sel.size) * itemsize
                      + 4 * N * (O1 * P1 + O2 * P2 + O3 * P2))

    kernel = _make_fused_kernel(ntaps, compute_dtype)

    # NOTE: at production sizes, add a grid axis tiling P1 (the spatial/M axis)
    # and set vmem_limit_bytes (v7x has 64 MiB VMEM); at this size one block
    # per image is far below the default scoped-VMEM limit.
    o1, o2, o3 = pl.pallas_call(
        kernel,
        out_shape=(jax.ShapeDtypeStruct((N, O1, P1), jnp.float32),
                   jax.ShapeDtypeStruct((N, O2, P2), jnp.float32),
                   jax.ShapeDtypeStruct((N, O3, P2), jnp.float32)),
        grid=(N,),
        in_specs=[
            pl.BlockSpec((None, K1, P1), lambda n: (n, 0, 0)),    # per-image patches
            pl.BlockSpec((ntaps, P1, P2), lambda n: (0, 0, 0)),   # gather matrices
            pl.BlockSpec((O1, K1), lambda n: (0, 0)),             # weights stay resident
            pl.BlockSpec((ntaps, O2, O1), lambda n: (0, 0, 0)),
            pl.BlockSpec((O3, O2), lambda n: (0, 0)),
        ],
        out_specs=(
            pl.BlockSpec((None, O1, P1), lambda n: (n, 0, 0)),
            pl.BlockSpec((None, O2, P2), lambda n: (n, 0, 0)),
            pl.BlockSpec((None, O3, P2), lambda n: (n, 0, 0)),
        ),
        compiler_params=pltpu.CompilerParams(
            dimension_semantics=("parallel",)),   # v7x: shard batch across 2 TCs
        cost_estimate=pl.CostEstimate(flops=flops, transcendentals=0,
                                      bytes_accessed=bytes_accessed),
    )(p1t, sel, w1m, w2t, w3m)

    # Free reshapes only -- the kernel already wrote NCHW (channel-major) data.
    x1 = o1.reshape(N, O1, H1, W1)
    x2 = o2.reshape(N, O2, H2, W2)
    x3 = o3.reshape(N, O3, H2, W2)
    return x1, x2, x3


def _reference_conv(x_nchw, w, stride):
    return jax.lax.conv_general_dilated(
        x_nchw, w, window_strides=(stride, stride), padding="VALID",
        dimension_numbers=("NCHW", "OIHW", "NCHW"))


if __name__ == "__main__":
    key = jax.random.PRNGKey(0)
    kx, kw1, kw2, kw3 = jax.random.split(key, 4)

    # Input consistent with the module: spatial 30 -> conv1(5,5) -> 6
    # -> conv2(3,3) -> 2 -> conv3(1,1) -> 2.
    N, Cin, H, W = 2, 3, 30, 30
    x = jax.random.normal(kx, (N, Cin, H, W), dtype=jnp.float32)

    # Deterministic synthetic weights (shapes from Net.__init__), scaled like
    # PyTorch's default kaiming-uniform fan-in scaling.
    w1 = jax.random.normal(kw1, (64, 3, 5, 5), jnp.float32) * (1.0 / (3 * 5 * 5) ** 0.5)
    w2 = jax.random.normal(kw2, (64, 64, 3, 3), jnp.float32) * (1.0 / (64 * 3 * 3) ** 0.5)
    w3 = jax.random.normal(kw3, (16, 64, 1, 1), jnp.float32) * (1.0 / 64 ** 0.5)

    fwd = jax.jit(net_forward, static_argnames=("k1", "k2"))

    # ---- float32 path (tight correctness check vs XLA conv reference) ------
    w1m, w2t, w3m = prep_weights(w1, w2, w3, jnp.float32)
    x1, x2, x3 = fwd(x, w1m, w2t, w3m, k1=5, k2=3)
    jax.block_until_ready((x1, x2, x3))

    assert x1.shape == (2, 64, 6, 6)
    assert x2.shape == (2, 64, 2, 2)
    assert x3.shape == (2, 16, 2, 2)

    r1 = _reference_conv(x, w1, 5)
    r2 = _reference_conv(r1, w2, 3)
    r3 = _reference_conv(r2, w3, 1)
    assert jnp.allclose(x1, r1, atol=5e-4, rtol=5e-4)
    assert jnp.allclose(x2, r2, atol=5e-4, rtol=5e-4)
    assert jnp.allclose(x3, r3, atol=5e-4, rtol=5e-4)

    # ---- bfloat16 compute path (MXU-native on v5e/v6e/v7x), f32 accumulate -
    w1mb, w2tb, w3mb = prep_weights(w1, w2, w3, jnp.bfloat16)
    b1, b2, b3 = fwd(x, w1mb, w2tb, w3mb, k1=5, k2=3)
    jax.block_until_ready((b1, b2, b3))
    assert jnp.allclose(b1, r1, atol=1e-1, rtol=1e-1)
    assert jnp.allclose(b2, r2, atol=1e-1, rtol=1e-1)
    assert jnp.allclose(b3, r3, atol=1e-1, rtol=1e-1)

    print("KERNEL_OK")
</pallas_src>

<mosaic_0001>
module attributes {stable_mosaic.version = 11 : i64} {
  func.func @kernel(%arg0: i32, %arg1: memref<1x75x36xf32, #tpu.memory_space<vmem>>, %arg2: memref<9x36x4xf32, #tpu.memory_space<vmem>>, %arg3: memref<64x75xf32, #tpu.memory_space<vmem>>, %arg4: memref<9x64x64xf32, #tpu.memory_space<vmem>>, %arg5: memref<16x64xf32, #tpu.memory_space<vmem>>, %arg6: memref<1x64x36xf32, #tpu.memory_space<vmem>>, %arg7: memref<1x64x4xf32, #tpu.memory_space<vmem>>, %arg8: memref<1x16x4xf32, #tpu.memory_space<vmem>>) attributes {dimension_semantics = [#tpu.dimension_semantics<parallel>], iteration_bounds = array<i64: 2>, scalar_prefetch = 0 : i64, scratch_operands = 0 : i64, tpu.core_type = #tpu.core_type<tc>, window_params = [{transform_indices = @transform_0, window_bounds = array<i64: 1, 75, 36>}, {pipeline_mode = #tpu.pipeline_mode<synchronous>, transform_indices = @transform_1, window_bounds = array<i64: 9, 36, 4>}, {pipeline_mode = #tpu.pipeline_mode<synchronous>, transform_indices = @transform_2, window_bounds = array<i64: 64, 75>}, {pipeline_mode = #tpu.pipeline_mode<synchronous>, transform_indices = @transform_3, window_bounds = array<i64: 9, 64, 64>}, {pipeline_mode = #tpu.pipeline_mode<synchronous>, transform_indices = @transform_4, window_bounds = array<i64: 16, 64>}, {transform_indices = @transform_5, window_bounds = array<i64: 1, 64, 36>}, {transform_indices = @transform_6, window_bounds = array<i64: 1, 64, 4>}, {transform_indices = @transform_7, window_bounds = array<i64: 1, 16, 4>}]} {
    %c0 = arith.constant 0 : index
    %c0_0 = arith.constant 0 : index
    %c0_1 = arith.constant 0 : index
    %0 = vector.load %arg1[%c0, %c0_0, %c0_1] : memref<1x75x36xf32, #tpu.memory_space<vmem>>, vector<1x75x36xf32>
    %1 = vector.shape_cast %0 : vector<1x75x36xf32> to vector<75x36xf32>
    %c0_2 = arith.constant 0 : index
    %c0_3 = arith.constant 0 : index
    %2 = vector.load %arg3[%c0_2, %c0_3] : memref<64x75xf32, #tpu.memory_space<vmem>>, vector<64x75xf32>
    %cst = arith.constant dense<0.000000e+00> : vector<64x36xf32>
    %3 = tpu.matmul %2, %1, %cst {dimension_numbers = #tpu.dot_dimension_numbers<[1], [0], [0], [1], [0, 0, 1, 1], [], []>} : vector<64x75xf32>, vector<75x36xf32>, vector<64x36xf32> -> vector<64x36xf32>
    %c0_4 = arith.constant 0 : index
    %c0_5 = arith.constant 0 : index
    %c0_6 = arith.constant 0 : index
    %4 = vector.load %arg2[%c0_4, %c0_5, %c0_6] : memref<9x36x4xf32, #tpu.memory_space<vmem>>, vector<1x36x4xf32>
    %5 = vector.shape_cast %4 : vector<1x36x4xf32> to vector<36x4xf32>
    %cst_7 = arith.constant dense<0.000000e+00> : vector<64x4xf32>
    %6 = tpu.matmul %3, %5, %cst_7 {dimension_numbers = #tpu.dot_dimension_numbers<[1], [0], [0], [1], [0, 0, 1, 1], [], []>} : vector<64x36xf32>, vector<36x4xf32>, vector<64x4xf32> -> vector<64x4xf32>
    %c0_8 = arith.constant 0 : index
    %c0_9 = arith.constant 0 : index
    %c0_10 = arith.constant 0 : index
    %7 = vector.load %arg4[%c0_8, %c0_9, %c0_10] : memref<9x64x64xf32, #tpu.memory_space<vmem>>, vector<1x64x64xf32>
    %8 = vector.shape_cast %7 : vector<1x64x64xf32> to vector<64x64xf32>
    %cst_11 = arith.constant dense<0.000000e+00> : vector<64x4xf32>
    %9 = tpu.matmul %8, %6, %cst_11 {dimension_numbers = #tpu.dot_dimension_numbers<[1], [0], [0], [1], [0, 0, 1, 1], [], []>} : vector<64x64xf32>, vector<64x4xf32>, vector<64x4xf32> -> vector<64x4xf32>
    %c1 = arith.constant 1 : index
    %c0_12 = arith.constant 0 : index
    %c0_13 = arith.constant 0 : index
    %10 = vector.load %arg2[%c1, %c0_12, %c0_13] : memref<9x36x4xf32, #tpu.memory_space<vmem>>, vector<1x36x4xf32>
    %11 = vector.shape_cast %10 : vector<1x36x4xf32> to vector<36x4xf32>
    %cst_14 = arith.constant dense<0.000000e+00> : vector<64x4xf32>
    %12 = tpu.matmul %3, %11, %cst_14 {dimension_numbers = #tpu.dot_dimension_numbers<[1], [0], [0], [1], [0, 0, 1, 1], [], []>} : vector<64x36xf32>, vector<36x4xf32>, vector<64x4xf32> -> vector<64x4xf32>
    %c1_15 = arith.constant 1 : index
    %c0_16 = arith.constant 0 : index
    %c0_17 = arith.constant 0 : index
    %13 = vector.load %arg4[%c1_15, %c0_16, %c0_17] : memref<9x64x64xf32, #tpu.memory_space<vmem>>, vector<1x64x64xf32>
    %14 = vector.shape_cast %13 : vector<1x64x64xf32> to vector<64x64xf32>
    %cst_18 = arith.constant dense<0.000000e+00> : vector<64x4xf32>
    %15 = tpu.matmul %14, %12, %cst_18 {dimension_numbers = #tpu.dot_dimension_numbers<[1], [0], [0], [1], [0, 0, 1, 1], [], []>} : vector<64x64xf32>, vector<64x4xf32>, vector<64x4xf32> -> vector<64x4xf32>
    %16 = arith.addf %9, %15 : vector<64x4xf32>
    %c2 = arith.constant 2 : index
    %c0_19 = arith.constant 0 : index
    %c0_20 = arith.constant 0 : index
    %17 = vector.load %arg2[%c2, %c0_19, %c0_20] : memref<9x36x4xf32, #tpu.memory_space<vmem>>, vector<1x36x4xf32>
    %18 = vector.shape_cast %17 : vector<1x36x4xf32> to vector<36x4xf32>
    %cst_21 = arith.constant dense<0.000000e+00> : vector<64x4xf32>
    %19 = tpu.matmul %3, %18, %cst_21 {dimension_numbers = #tpu.dot_dimension_numbers<[1], [0], [0], [1], [0, 0, 1, 1], [], []>} : vector<64x36xf32>, vector<36x4xf32>, vector<64x4xf32> -> vector<64x4xf32>
    %c2_22 = arith.constant 2 : index
    %c0_23 = arith.constant 0 : index
    %c0_24 = arith.constant 0 : index
    %20 = vector.load %arg4[%c2_22, %c0_23, %c0_24] : memref<9x64x64xf32, #tpu.memory_space<vmem>>, vector<1x64x64xf32>
    %21 = vector.shape_cast %20 : vector<1x64x64xf32> to vector<64x64xf32>
    %cst_25 = arith.constant dense<0.000000e+00> : vector<64x4xf32>
    %22 = tpu.matmul %21, %19, %cst_25 {dimension_numbers = #tpu.dot_dimension_numbers<[1], [0], [0], [1], [0, 0, 1, 1], [], []>} : vector<64x64xf32>, vector<64x4xf32>, vector<64x4xf32> -> vector<64x4xf32>
    %23 = arith.addf %16, %22 : vector<64x4xf32>
    %c3 = arith.constant 3 : index
    %c0_26 = arith.constant 0 : index
    %c0_27 = arith.constant 0 : index
    %24 = vector.load %arg2[%c3, %c0_26, %c0_27] : memref<9x36x4xf32, #tpu.memory_space<vmem>>, vector<1x36x4xf32>
    %25 = vector.shape_cast %24 : vector<1x36x4xf32> to vector<36x4xf32>
    %cst_28 = arith.constant dense<0.000000e+00> : vector<64x4xf32>
    %26 = tpu.matmul %3, %25, %cst_28 {dimension_numbers = #tpu.dot_dimension_numbers<[1], [0], [0], [1], [0, 0, 1, 1], [], []>} : vector<64x36xf32>, vector<36x4xf32>, vector<64x4xf32> -> vector<64x4xf32>
    %c3_29 = arith.constant 3 : index
    %c0_30 = arith.constant 0 : index
    %c0_31 = arith.constant 0 : index
    %27 = vector.load %arg4[%c3_29, %c0_30, %c0_31] : memref<9x64x64xf32, #tpu.memory_space<vmem>>, vector<1x64x64xf32>
    %28 = vector.shape_cast %27 : vector<1x64x64xf32> to vector<64x64xf32>
    %cst_32 = arith.constant dense<0.000000e+00> : vector<64x4xf32>
    %29 = tpu.matmul %28, %26, %cst_32 {dimension_numbers = #tpu.dot_dimension_numbers<[1], [0], [0], [1], [0, 0, 1, 1], [], []>} : vector<64x64xf32>, vector<64x4xf32>, vector<64x4xf32> -> vector<64x4xf32>
    %30 = arith.addf %23, %29 : vector<64x4xf32>
    %c4 = arith.constant 4 : index
    %c0_33 = arith.constant 0 : index
    %c0_34 = arith.constant 0 : index
    %31 = vector.load %arg2[%c4, %c0_33, %c0_34] : memref<9x36x4xf32, #tpu.memory_space<vmem>>, vector<1x36x4xf32>
    %32 = vector.shape_cast %31 : vector<1x36x4xf32> to vector<36x4xf32>
    %cst_35 = arith.constant dense<0.000000e+00> : vector<64x4xf32>
    %33 = tpu.matmul %3, %32, %cst_35 {dimension_numbers = #tpu.dot_dimension_numbers<[1], [0], [0], [1], [0, 0, 1, 1], [], []>} : vector<64x36xf32>, vector<36x4xf32>, vector<64x4xf32> -> vector<64x4xf32>
    %c4_36 = arith.constant 4 : index
    %c0_37 = arith.constant 0 : index
    %c0_38 = arith.constant 0 : index
    %34 = vector.load %arg4[%c4_36, %c0_37, %c0_38] : memref<9x64x64xf32, #tpu.memory_space<vmem>>, vector<1x64x64xf32>
    %35 = vector.shape_cast %34 : vector<1x64x64xf32> to vector<64x64xf32>
    %cst_39 = arith.constant dense<0.000000e+00> : vector<64x4xf32>
    %36 = tpu.matmul %35, %33, %cst_39 {dimension_numbers = #tpu.dot_dimension_numbers<[1], [0], [0], [1], [0, 0, 1, 1], [], []>} : vector<64x64xf32>, vector<64x4xf32>, vector<64x4xf32> -> vector<64x4xf32>
    %37 = arith.addf %30, %36 : vector<64x4xf32>
    %c5 = arith.constant 5 : index
    %c0_40 = arith.constant 0 : index
    %c0_41 = arith.constant 0 : index
    %38 = vector.load %arg2[%c5, %c0_40, %c0_41] : memref<9x36x4xf32, #tpu.memory_space<vmem>>, vector<1x36x4xf32>
    %39 = vector.shape_cast %38 : vector<1x36x4xf32> to vector<36x4xf32>
    %cst_42 = arith.constant dense<0.000000e+00> : vector<64x4xf32>
    %40 = tpu.matmul %3, %39, %cst_42 {dimension_numbers = #tpu.dot_dimension_numbers<[1], [0], [0], [1], [0, 0, 1, 1], [], []>} : vector<64x36xf32>, vector<36x4xf32>, vector<64x4xf32> -> vector<64x4xf32>
    %c5_43 = arith.constant 5 : index
    %c0_44 = arith.constant 0 : index
    %c0_45 = arith.constant 0 : index
    %41 = vector.load %arg4[%c5_43, %c0_44, %c0_45] : memref<9x64x64xf32, #tpu.memory_space<vmem>>, vector<1x64x64xf32>
    %42 = vector.shape_cast %41 : vector<1x64x64xf32> to vector<64x64xf32>
    %cst_46 = arith.constant dense<0.000000e+00> : vector<64x4xf32>
    %43 = tpu.matmul %42, %40, %cst_46 {dimension_numbers = #tpu.dot_dimension_numbers<[1], [0], [0], [1], [0, 0, 1, 1], [], []>} : vector<64x64xf32>, vector<64x4xf32>, vector<64x4xf32> -> vector<64x4xf32>
    %44 = arith.addf %37, %43 : vector<64x4xf32>
    %c6 = arith.constant 6 : index
    %c0_47 = arith.constant 0 : index
    %c0_48 = arith.constant 0 : index
    %45 = vector.load %arg2[%c6, %c0_47, %c0_48] : memref<9x36x4xf32, #tpu.memory_space<vmem>>, vector<1x36x4xf32>
    %46 = vector.shape_cast %45 : vector<1x36x4xf32> to vector<36x4xf32>
    %cst_49 = arith.constant dense<0.000000e+00> : vector<64x4xf32>
    %47 = tpu.matmul %3, %46, %cst_49 {dimension_numbers = #tpu.dot_dimension_numbers<[1], [0], [0], [1], [0, 0, 1, 1], [], []>} : vector<64x36xf32>, vector<36x4xf32>, vector<64x4xf32> -> vector<64x4xf32>
    %c6_50 = arith.constant 6 : index
    %c0_51 = arith.constant 0 : index
    %c0_52 = arith.constant 0 : index
    %48 = vector.load %arg4[%c6_50, %c0_51, %c0_52] : memref<9x64x64xf32, #tpu.memory_space<vmem>>, vector<1x64x64xf32>
    %49 = vector.shape_cast %48 : vector<1x64x64xf32> to vector<64x64xf32>
    %cst_53 = arith.constant dense<0.000000e+00> : vector<64x4xf32>
    %50 = tpu.matmul %49, %47, %cst_53 {dimension_numbers = #tpu.dot_dimension_numbers<[1], [0], [0], [1], [0, 0, 1, 1], [], []>} : vector<64x64xf32>, vector<64x4xf32>, vector<64x4xf32> -> vector<64x4xf32>
    %51 = arith.addf %44, %50 : vector<64x4xf32>
    %c7 = arith.constant 7 : index
    %c0_54 = arith.constant 0 : index
    %c0_55 = arith.constant 0 : index
    %52 = vector.load %arg2[%c7, %c0_54, %c0_55] : memref<9x36x4xf32, #tpu.memory_space<vmem>>, vector<1x36x4xf32>
    %53 = vector.shape_cast %52 : vector<1x36x4xf32> to vector<36x4xf32>
    %cst_56 = arith.constant dense<0.000000e+00> : vector<64x4xf32>
    %54 = tpu.matmul %3, %53, %cst_56 {dimension_numbers = #tpu.dot_dimension_numbers<[1], [0], [0], [1], [0, 0, 1, 1], [], []>} : vector<64x36xf32>, vector<36x4xf32>, vector<64x4xf32> -> vector<64x4xf32>
    %c7_57 = arith.constant 7 : index
    %c0_58 = arith.constant 0 : index
    %c0_59 = arith.constant 0 : index
    %55 = vector.load %arg4[%c7_57, %c0_58, %c0_59] : memref<9x64x64xf32, #tpu.memory_space<vmem>>, vector<1x64x64xf32>
    %56 = vector.shape_cast %55 : vector<1x64x64xf32> to vector<64x64xf32>
    %cst_60 = arith.constant dense<0.000000e+00> : vector<64x4xf32>
    %57 = tpu.matmul %56, %54, %cst_60 {dimension_numbers = #tpu.dot_dimension_numbers<[1], [0], [0], [1], [0, 0, 1, 1], [], []>} : vector<64x64xf32>, vector<64x4xf32>, vector<64x4xf32> -> vector<64x4xf32>
    %58 = arith.addf %51, %57 : vector<64x4xf32>
    %c8 = arith.constant 8 : index
    %c0_61 = arith.constant 0 : index
    %c0_62 = arith.constant 0 : index
    %59 = vector.load %arg2[%c8, %c0_61, %c0_62] : memref<9x36x4xf32, #tpu.memory_space<vmem>>, vector<1x36x4xf32>
    %60 = vector.shape_cast %59 : vector<1x36x4xf32> to vector<36x4xf32>
    %cst_63 = arith.constant dense<0.000000e+00> : vector<64x4xf32>
    %61 = tpu.matmul %3, %60, %cst_63 {dimension_numbers = #tpu.dot_dimension_numbers<[1], [0], [0], [1], [0, 0, 1, 1], [], []>} : vector<64x36xf32>, vector<36x4xf32>, vector<64x4xf32> -> vector<64x4xf32>
    %c8_64 = arith.constant 8 : index
    %c0_65 = arith.constant 0 : index
    %c0_66 = arith.constant 0 : index
    %62 = vector.load %arg4[%c8_64, %c0_65, %c0_66] : memref<9x64x64xf32, #tpu.memory_space<vmem>>, vector<1x64x64xf32>
    %63 = vector.shape_cast %62 : vector<1x64x64xf32> to vector<64x64xf32>
    %cst_67 = arith.constant dense<0.000000e+00> : vector<64x4xf32>
    %64 = tpu.matmul %63, %61, %cst_67 {dimension_numbers = #tpu.dot_dimension_numbers<[1], [0], [0], [1], [0, 0, 1, 1], [], []>} : vector<64x64xf32>, vector<64x4xf32>, vector<64x4xf32> -> vector<64x4xf32>
    %65 = arith.addf %58, %64 : vector<64x4xf32>
    %c0_68 = arith.constant 0 : index
    %c0_69 = arith.constant 0 : index
    %66 = vector.load %arg5[%c0_68, %c0_69] : memref<16x64xf32, #tpu.memory_space<vmem>>, vector<16x64xf32>
    %cst_70 = arith.constant dense<0.000000e+00> : vector<16x4xf32>
    %67 = tpu.matmul %66, %65, %cst_70 {dimension_numbers = #tpu.dot_dimension_numbers<[1], [0], [0], [1], [0, 0, 1, 1], [], []>} : vector<16x64xf32>, vector<64x4xf32>, vector<16x4xf32> -> vector<16x4xf32>
    %c0_71 = arith.constant 0 : index
    %c0_72 = arith.constant 0 : index
    %c0_73 = arith.constant 0 : index
    %68 = vector.load %arg6[%c0_71, %c0_72, %c0_73] : memref<1x64x36xf32, #tpu.memory_space<vmem>>, vector<1x64x36xf32>
    %69 = vector.shape_cast %68 : vector<1x64x36xf32> to vector<64x36xf32>
    %70 = vector.shape_cast %3 : vector<64x36xf32> to vector<1x64x36xf32>
    tpu.vector_store %arg6[%c0_71, %c0_72, %c0_73], %70 {strides = array<i32>} : memref<1x64x36xf32, #tpu.memory_space<vmem>>, vector<1x64x36xf32>,
    %c0_74 = arith.constant 0 : index
    %c0_75 = arith.constant 0 : index
    %c0_76 = arith.constant 0 : index
    %71 = vector.load %arg7[%c0_74, %c0_75, %c0_76] : memref<1x64x4xf32, #tpu.memory_space<vmem>>, vector<1x64x4xf32>
    %72 = vector.shape_cast %71 : vector<1x64x4xf32> to vector<64x4xf32>
    %73 = vector.shape_cast %65 : vector<64x4xf32> to vector<1x64x4xf32>
    tpu.vector_store %arg7[%c0_74, %c0_75, %c0_76], %73 {strides = array<i32>} : memref<1x64x4xf32, #tpu.memory_space<vmem>>, vector<1x64x4xf32>,
    %c0_77 = arith.constant 0 : index
    %c0_78 = arith.constant 0 : index
    %c0_79 = arith.constant 0 : index
    %74 = vector.load %arg8[%c0_77, %c0_78, %c0_79] : memref<1x16x4xf32, #tpu.memory_space<vmem>>, vector<1x16x4xf32>
    %75 = vector.shape_cast %74 : vector<1x16x4xf32> to vector<16x4xf32>
    %76 = vector.shape_cast %67 : vector<16x4xf32> to vector<1x16x4xf32>
    tpu.vector_store %arg8[%c0_77, %c0_78, %c0_79], %76 {strides = array<i32>} : memref<1x16x4xf32, #tpu.memory_space<vmem>>, vector<1x16x4xf32>,
    return
  }
  func.func @transform_0(%arg0: i32) -> (i32, i32, i32) {
    %c0_i32 = arith.constant 0 : i32
    %c0_i32_0 = arith.constant 0 : i32
    %c0_i32_1 = arith.constant 0 : i32
    return %arg0, %c0_i32, %c0_i32_0 : i32, i32, i32
  }
  func.func @transform_1(%arg0: i32) -> (i32, i32, i32) {
    %c0_i32 = arith.constant 0 : i32
    %c0_i32_0 = arith.constant 0 : i32
    %c0_i32_1 = arith.constant 0 : i32
    %c0_i32_2 = arith.constant 0 : i32
    return %c0_i32, %c0_i32_0, %c0_i32_1 : i32, i32, i32
  }
  func.func @transform_2(%arg0: i32) -> (i32, i32) {
    %c0_i32 = arith.constant 0 : i32
    %c0_i32_0 = arith.constant 0 : i32
    %c0_i32_1 = arith.constant 0 : i32
    return %c0_i32, %c0_i32_0 : i32, i32
  }
  func.func @transform_3(%arg0: i32) -> (i32, i32, i32) {
    %c0_i32 = arith.constant 0 : i32
    %c0_i32_0 = arith.constant 0 : i32
    %c0_i32_1 = arith.constant 0 : i32
    %c0_i32_2 = arith.constant 0 : i32
    return %c0_i32, %c0_i32_0, %c0_i32_1 : i32, i32, i32
  }
  func.func @transform_4(%arg0: i32) -> (i32, i32) {
    %c0_i32 = arith.constant 0 : i32
    %c0_i32_0 = arith.constant 0 : i32
    %c0_i32_1 = arith.constant 0 : i32
    return %c0_i32, %c0_i32_0 : i32, i32
  }
  func.func @transform_5(%arg0: i32) -> (i32, i32, i32) {
    %c0_i32 = arith.constant 0 : i32
    %c0_i32_0 = arith.constant 0 : i32
    %c0_i32_1 = arith.constant 0 : i32
    return %arg0, %c0_i32, %c0_i32_0 : i32, i32, i32
  }
  func.func @transform_6(%arg0: i32) -> (i32, i32, i32) {
    %c0_i32 = arith.constant 0 : i32
    %c0_i32_0 = arith.constant 0 : i32
    %c0_i32_1 = arith.constant 0 : i32
    return %arg0, %c0_i32, %c0_i32_0 : i32, i32, i32
  }
  func.func @transform_7(%arg0: i32) -> (i32, i32, i32) {
    %c0_i32 = arith.constant 0 : i32
    %c0_i32_0 = arith.constant 0 : i32
    %c0_i32_1 = arith.constant 0 : i32
    return %arg0, %c0_i32, %c0_i32_0 : i32, i32, i32
  }
}

</mosaic_0001>

<bundles_post_ra>
// kernel: net_forward.1
= control target key start
LH: loop header
LB: loop body
LE: loop exit
PB: predicated region body
PF: predicated region fallthrough
CT: control target
= control target key end

     0   :  { %s4160_s24 = smov 0   ;;  %s4922_s0 = inlined_call_operand.vmem [shape: f32[2,75,36], index: 0, kind: input, shape index: {}]   ;;  %s4923_s1 = inlined_call_operand.vmem [shape: f32[9,36,4], index: 1, kind: input, shape index: {}]   ;;  %s4924_s2 = inlined_call_operand.vmem [shape: f32[64,75], index: 2, kind: input, shape index: {}]   ;;  %s4925_s3 = inlined_call_operand.vmem [shape: f32[9,64,64], index: 3, kind: input, shape index: {}]   ;;  %s4926_s4 = inlined_call_operand.vmem [shape: f32[16,64], index: 4, kind: input, shape index: {}]   ;;  %s4927_s5 = inlined_call_operand.vmem [shape: f32[2,64,36], index: 5, kind: output, shape index: {0}]   ;;  %s4928_s6 = inlined_call_operand.vmem [shape: f32[2,64,4], index: 6, kind: output, shape index: {1}]   ;;  %s4929_s7 = inlined_call_operand.vmem [shape: f32[2,16,4], index: 7, kind: output, shape index: {2}]  }
   0x1 LB: > { %s3028_s25 = sadd.s32 4294967295, %s4118_s24   ;;  %p3032_p0 = scmp.ge.s32.totalorder %s4118_s24, 1  ;;  %s4118_s24 = sphi %s4160_s24, %s18_s24  }
   0x2   : > { %p242_p1 = scmp.lt.s32.totalorder %s4118_s24, 3 }
   0x4   : > { %p243_p2 = pnand %p3032_p0, %p242_p1 }
   0x5   : > { %p284_p3 = scmp.lt.s32.totalorder (!%p243_p2), %s3028_s25, 1 }
   0x6   : > { %246 = sbr.rel (%p243_p2) target bundleno = 1221 (0x4c5), region = 40 }
   0xb   : > { %v314_v0 = vld [vmem:[%s4924_s2] sm:$0xff]  ;;  %vm322_vm0 = vcmask 613376   ;;  %vm486_vm1 = vcmask 1043456   ;;  %s4931_s25 = smov (!%p284_p3, %s3028_s25), 1  ;;  %v459_v2 = vld [vmem:[%s4923_s1 + $0x18] sm:$0xff]  ;;  %v458_v3 = vld [vmem:[%s4923_s1 + $0x10] sm:$0xff] }
   0xc   : > { %3622 = vmatprep.mubr.msk.f32.mxu0 %vm322_vm0, %v314_v0  ;;  %v460_v1 = vld [vmem:[%s4923_s1 + $0x20] sm:$0xf]  ;;  %s4103_s9 = smul.u32 80, %s4931_s25  ;;  %vm347_vm2 = vcmask 1042432   ;;  %v315_v14 = vld [vmem:[%s4924_s2 + $0x8] sm:$0xff]  ;;  %v316_v15 = vld [vmem:[%s4924_s2 + $0x10] sm:$0xff] }
   0xd   : > { %3634 = vmatprep.subr.msk.mxu1 %vm486_vm1, %v460_v1  ;;  %v317_v16 = vld [vmem:[%s4924_s2 + $0x18] sm:$0xff]  ;;  %v318_v17 = vld [vmem:[%s4924_s2 + $0x20] sm:$0xff]  ;;  %v319_v18 = vld [vmem:[%s4924_s2 + $0x28] sm:$0xff]  ;;  %vm461_vm3 = vcmask 293888   ;;  %vm726_vm4 = vcmask 523264   ;;  %vm2896_vm5 = vcmask 31744  }
   0xe   : > { %3635 = vmatpush3.msk.msra.mxu1 %vm486_vm1, %v460_v1  ;;  %s288_s14 = scalar_lea.vmem %s4922_s0, %s4103_s9  ;;  %v320_v19 = vld [vmem:[%s4924_s2 + $0x30] sm:$0xff]  ;;  %v321_v20 = vld [vmem:[%s4924_s2 + $0x38] sm:$0xff]  ;;  %v457_v21 = vld [vmem:[%s4923_s1 + $0x8] sm:$0xff]  ;;  %s3312_s28 = sshll.u32 %s4931_s25, 4 }
   0xf   : > { %3636 = vmatprep.subr.mxu1 %v459_v2  ;;  %v313_v4 = vld [vmem:[%s288_s14 + $0x48] sm:$0x7]  ;;  %v312_v5 = vld [vmem:[%s288_s14 + $0x40] sm:$0xff]  ;;  %v311_v6 = vld [vmem:[%s288_s14 + $0x38] sm:$0xff]  ;;  %s303_s8 = scalar_lea.vmem %s4929_s7, %s3312_s28 }
  0x10   : > { %3637 = vmatpush3.msra.mxu1 %v459_v2  ;;  %3602 = vmatprep.subr.msk.mxu0 %vm347_vm2, %v313_v4  ;;  %v310_v7 = vld [vmem:[%s288_s14 + $0x30] sm:$0xff]  ;;  %v309_v8 = vld [vmem:[%s288_s14 + $0x28] sm:$0xff]  ;;  %v308_v9 = vld [vmem:[%s288_s14 + $0x20] sm:$0xff] }
  0x11   : > { %3638 = vmatprep.subr.mxu1 %v458_v3  ;;  %3603 = vmatpush3.msk.msra.mxu0 %vm347_vm2, %v313_v4  ;;  %v307_v10 = vld [vmem:[%s288_s14 + $0x18] sm:$0xff]  ;;  %v306_v11 = vld [vmem:[%s288_s14 + $0x10] sm:$0xff]  ;;  %v305_v12 = vld [vmem:[%s288_s14 + $0x8] sm:$0xff] }
  0x12   : > { %3639 = vmatpush3.msra.mxu1 %v458_v3  ;;  %3604 = vmatprep.subr.mxu0 %v312_v5  ;;  %v304_v13 = vld [vmem:[%s288_s14] sm:$0xff]  ;;  %v3062_v23 = vld [vmem:[%s4923_s1 + $0x48] sm:$0xf]  ;;  %s3310_s14 = sshll.u32 %s4931_s25, 6  ;;  %v3060_v28 = vld [vmem:[%s4923_s1 + $0x38] sm:$0xff] }
  0x13   : > { %3605 = vmatpush3.msra.mxu0 %v312_v5  ;;  %3640 = vmatprep.subr.mxu1 %v457_v21  ;;  %v456_v22 = vld [vmem:[%s4923_s1] sm:$0xff]  ;;  %s4233_s17 = scalar_lea.vmem %s4927_s5, %s3310_s14  ;;  %v3059_v30 = vld [vmem:[%s4923_s1 + $0x30] sm:$0xff]  ;;  %v3058_v32 = vld [vmem:[%s4923_s1 + $0x28] sm:$0xff]  ;;  %s4890_s26 = scalar_lea.vmem %s4928_s6, %s3310_s14 }
  0x14   : > { %3606 = vmatprep.subr.mxu0 %v311_v6  ;;  %3641 = vmatpush3.msra.mxu1 %v457_v21  ;;  %v3061_v26 = vld [vmem:[%s4923_s1 + $0x40] sm:$0xff]  ;;  %v596_v52 = vld [vmem:[%s4925_s3 + $0x8] sm:$0xff]  ;;  %v597_v53 = vld [vmem:[%s4925_s3 + $0x10] sm:$0xff] }
  0x15   : > { %3607 = vmatpush3.msra.mxu0 %v311_v6  ;;  %3642 = vmatprep.subr.mxu1 %v456_v22  ;;  %v3072_v36 = vld [vmem:[%s4925_s3 + $0x40] sm:$0xff]  ;;  %v598_v56 = vld [vmem:[%s4925_s3 + $0x18] sm:$0xff]  ;;  %v600_v58 = vld [vmem:[%s4925_s3 + $0x28] sm:$0xff] }
  0x16   : > { %3608 = vmatprep.subr.mxu0 %v310_v7  ;;  %3643 = vmatpush3.msra.mxu1 %v456_v22  ;;  %v595_v37 = vld [vmem:[%s4925_s3] sm:$0xff]  ;;  %v601_v59 = vld [vmem:[%s4925_s3 + $0x30] sm:$0xff]  ;;  %v602_v60 = vld [vmem:[%s4925_s3 + $0x38] sm:$0xff] }
  0x17   : > { %3609 = vmatpush3.msra.mxu0 %v310_v7  ;;  %3656 = vmatprep.subr.msk.mxu1 %vm486_vm1, %v3062_v23  ;;  %v599_v57 = vld [vmem:[%s4925_s3 + $0x20] sm:$0xff]  ;;  %v3073_v61 = vld [vmem:[%s4925_s3 + $0x48] sm:$0xff]  ;;  %v3100_v62 = vld [vmem:[%s4923_s1 + $0x70] sm:$0xf] }
  0x18   : > { %3610 = vmatprep.subr.mxu0 %v309_v8  ;;  %v3074_v63 = vld [vmem:[%s4925_s3 + $0x50] sm:$0xff]  ;;  %v3099_v0 = vld [vmem:[%s4923_s1 + $0x68] sm:$0xff]  ;;  %v3075_v1 = vld [vmem:[%s4925_s3 + $0x58] sm:$0xff] }
  0x19   : > { %3611 = vmatpush3.msra.mxu0 %v309_v8  ;;  %v3098_v2 = vld [vmem:[%s4923_s1 + $0x60] sm:$0xff]  ;;  %v3097_v4 = vld [vmem:[%s4923_s1 + $0x58] sm:$0xff]  ;;  %v3077_v5 = vld [vmem:[%s4925_s3 + $0x68] sm:$0xff] }
  0x1a   : > { %3612 = vmatprep.subr.mxu0 %v308_v9  ;;  %v3076_v3 = vld [vmem:[%s4925_s3 + $0x60] sm:$0xff]  ;;  %v3096_v6 = vld [vmem:[%s4923_s1 + $0x50] sm:$0xff]  ;;  %v3130_v8 = vld [vmem:[%s4923_s1 + $0x98] sm:$0xf] }
  0x1b   : > { %3613 = vmatpush3.msra.mxu0 %v308_v9  ;;  %v3078_v7 = vld [vmem:[%s4925_s3 + $0x70] sm:$0xff]  ;;  %v3079_v9 = vld [vmem:[%s4925_s3 + $0x78] sm:$0xff] }
  0x1c   : > { %3614 = vmatprep.subr.mxu0 %v307_v10  ;;  %v3188_v21 = vld [vmem:[%s4923_s1 + $0xd8] sm:$0xff]  ;;  %v3187_v22 = vld [vmem:[%s4923_s1 + $0xd0] sm:$0xff] }
  0x1d   : > { %3615 = vmatpush3.msra.mxu0 %v307_v10  ;;  %v3129_v10 = vld [vmem:[%s4923_s1 + $0x90] sm:$0xff] }
  0x1e   : > { %3616 = vmatprep.subr.mxu0 %v306_v11 }
  0x1f   : > { %3617 = vmatpush3.msra.mxu0 %v306_v11  ;;  %v3128_v11 = vld [vmem:[%s4923_s1 + $0x88] sm:$0xff] }
  0x20   : > { %3618 = vmatprep.subr.mxu0 %v305_v12 }
  0x21   : > { %3619 = vmatpush3.msra.mxu0 %v305_v12  ;;  %v3127_v12 = vld [vmem:[%s4923_s1 + $0x80] sm:$0xff] }
  0x22   : > { %3620 = vmatprep.subr.mxu0 %v304_v13 }
  0x23   : > { %3621 = vmatpush3.msra.mxu0 %v304_v13  ;;  %v3126_v13 = vld [vmem:[%s4923_s1 + $0x78] sm:$0xff] }
  0x24   : > { %3623 = vmatmul.mubr.msk.f32.vlgmr.msra.gmra.mxu0 %vm322_vm0, %v315_v14  ;;  %v3160_v14 = vld [vmem:[%s4923_s1 + $0xc0] sm:$0xf] }
  0x25   : > { %3625 = vmatprep.mubr.msk.f32.mxu0 %vm322_vm0, %v316_v15  ;;  %v3159_v15 = vld [vmem:[%s4923_s1 + $0xb8] sm:$0xff] }
  0x28   : > { %3626 = vmatmul.mubr.msk.f32.gmra.mxu0 %vm322_vm0, %v317_v16  ;;  %v3158_v16 = vld [vmem:[%s4923_s1 + $0xb0] sm:$0xff] }
  0x29   : > { %3628 = vmatprep.mubr.msk.f32.mxu0 %vm322_vm0, %v318_v17  ;;  %v3157_v17 = vld [vmem:[%s4923_s1 + $0xa8] sm:$0xff] }
  0x2c   : > { %3629 = vmatmul.mubr.msk.f32.gmra.mxu0 %vm322_vm0, %v319_v18  ;;  %v3156_v18 = vld [vmem:[%s4923_s1 + $0xa0] sm:$0xff] }
  0x2d   : > { %3631 = vmatprep.mubr.msk.f32.mxu0 %vm322_vm0, %v320_v19  ;;  %v3190_v19 = vld [vmem:[%s4923_s1 + $0xe8] sm:$0xf] }
  0x30   : > { %3632 = vmatmul.mubr.msk.f32.gmra.mxu0 %vm322_vm0, %v321_v20  ;;  %v3189_v20 = vld [vmem:[%s4923_s1 + $0xe0] sm:$0xff] }
  0x31   : > { %3694 = vmatprep.mubr.msk.f32.mxu0 %vm726_vm4, %v3072_v36  ;;  %v3216_v36 = vld [vmem:[%s4923_s1 + $0xf0] sm:$0xff] }
  0xe4   : > { %v4235_v24 = vpop.f32.mrf.mxu0 }
  0xe5   : > { %2889 = vst.msk [vmem:[%s4233_s17 + $0x8] sm:$0xff] %vm461_vm3, %v4235_v24 }
  0xe6   : > { %v4240_v25 = vpop.f32.mrf.mxu0 }
  0xe7   : > { %3644 = vmatprep.mubr.msk.f32.mxu1 %vm461_vm3, %v4240_v25  ;;  %2888 = vst.msk [vmem:[%s4233_s17] sm:$0xff] %vm461_vm3, %v4240_v25 }
  0xe8   : > { %v4250_v27 = vpop.f32.mrf.mxu0  ;;  %3645 = vmatmul.mubr.msk.f32.vlgmr.msra.gmra.mxu1 %vm461_vm3, %v4235_v24 }
  0xe9   : > { %3657 = vmatpush3.msk.msra.mxu1 %vm486_vm1, %v3062_v23  ;;  %2891 = vst.msk [vmem:[%s4233_s17 + $0x18] sm:$0xff] %vm461_vm3, %v4250_v27  ;;  %v3186_v23 = vld [vmem:[%s4923_s1 + $0xc8] sm:$0xff] }
  0xea   : > { %v4261_v29 = vpop.f32.mrf.mxu0  ;;  %3658 = vmatprep.subr.mxu1 %v3061_v26 }
  0xeb   : > { %3647 = vmatprep.mubr.msk.f32.mxu1 %vm461_vm3, %v4261_v29  ;;  %3659 = vmatpush3.msra.mxu1 %v3061_v26  ;;  %2890 = vst.msk [vmem:[%s4233_s17 + $0x10] sm:$0xff] %vm461_vm3, %v4261_v29  ;;  %v3220_v26 = vld [vmem:[%s4923_s1 + $0x110] sm:$0xf] }
  0xec   : > { %v4271_v31 = vpop.f32.mrf.mxu0  ;;  %3648 = vmatmul.mubr.msk.f32.gmra.mxu1 %vm461_vm3, %v4250_v27  ;;  %3660 = vmatprep.subr.mxu1 %v3060_v28 }
  0xed   : > { %3661 = vmatpush3.msra.mxu1 %v3060_v28  ;;  %2893 = vst.msk [vmem:[%s4233_s17 + $0x28] sm:$0xff] %vm461_vm3, %v4271_v31  ;;  %v3219_v28 = vld [vmem:[%s4923_s1 + $0x108] sm:$0xff] }
  0xee   : > { %v4281_v33 = vpop.f32.mrf.mxu0  ;;  %3662 = vmatprep.subr.mxu1 %v3059_v30 }
  0xef   : > { %3650 = vmatprep.mubr.msk.f32.mxu1 %vm461_vm3, %v4281_v33  ;;  %3663 = vmatpush3.msra.mxu1 %v3059_v30  ;;  %2892 = vst.msk [vmem:[%s4233_s17 + $0x20] sm:$0xff] %vm461_vm3, %v4281_v33  ;;  %v3218_v30 = vld [vmem:[%s4923_s1 + $0x100] sm:$0xff] }
  0xf0   : > { %v4288_v34 = vpop.f32.mrf.mxu0  ;;  %3651 = vmatmul.mubr.msk.f32.gmra.mxu1 %vm461_vm3, %v4271_v31  ;;  %3664 = vmatprep.subr.mxu1 %v3058_v32 }
  0xf1   : > { %3665 = vmatpush3.msra.mxu1 %v3058_v32  ;;  %2895 = vst.msk [vmem:[%s4233_s17 + $0x38] sm:$0xff] %vm461_vm3, %v4288_v34  ;;  %v3217_v32 = vld [vmem:[%s4923_s1 + $0xf8] sm:$0xff] }
  0xf2   : > { %v4295_v35 = vpop.f32.mrf.mxu0 }
  0xf3   : > { %3653 = vmatprep.mubr.msk.f32.mxu1 %vm461_vm3, %v4295_v35  ;;  %2894 = vst.msk [vmem:[%s4233_s17 + $0x30] sm:$0xff] %vm461_vm3, %v4295_v35 }
  0xf4   : > { %3654 = vmatmul.mubr.msk.f32.gmra.mxu1 %vm461_vm3, %v4288_v34 }
  0xf5   : > { %3666 = vmatprep.mubr.msk.f32.mxu1 %vm461_vm3, %v4240_v25 }
  0xf8   : > { %3667 = vmatmul.mubr.msk.f32.vlgmr.msra.gmra.mxu1 %vm461_vm3, %v4235_v24 }
  0xf9   : > { %3669 = vmatprep.mubr.msk.f32.mxu1 %vm461_vm3, %v4261_v29 }
  0xfc   : > { %3670 = vmatmul.mubr.msk.f32.gmra.mxu1 %vm461_vm3, %v4250_v27 }
  0xfd   : > { %3672 = vmatprep.mubr.msk.f32.mxu1 %vm461_vm3, %v4281_v33 }
 0x100   : > { %3673 = vmatmul.mubr.msk.f32.gmra.mxu1 %vm461_vm3, %v4271_v31 }
 0x101   : > { %3675 = vmatprep.mubr.msk.f32.mxu1 %vm461_vm3, %v4295_v35 }
 0x104   : > { %3676 = vmatmul.mubr.msk.f32.gmra.mxu1 %vm461_vm3, %v4288_v34 }
 0x105   : > { %3722 = vmatprep.mubr.msk.f32.mxu1 %vm726_vm4, %v595_v37  ;;  %v3250_v37 = vld [vmem:[%s4923_s1 + $0x138] sm:$0xf] }
 0x1a8   : > { %v3646_v38 = vpop.f32.mrf.mxu1 }
 0x1aa   : > { %v556_v39 = vpop.f32.mrf.mxu1 }
 0x1ac   : > { %v3649_v40 = vpop.f32.mrf.mxu1 }
 0x1ae   : > { %v566_v41 = vpop.f32.mrf.mxu1 }
 0x1b0   : > { %v3652_v42 = vpop.f32.mrf.mxu1 }
 0x1b2   : > { %v576_v43 = vpop.f32.mrf.mxu1 }
 0x1b4   : > { %v3655_v44 = vpop.f32.mrf.mxu1 }
 0x1b5   : > { %3706 = vmatprep.subr.mxu1 %v3655_v44 }
 0x1b6   : > { %v586_v45 = vpop.f32.mrf.mxu1  ;;  %3707 = vmatpush3.msra.mxu1 %v3655_v44  ;;  %v3278_v44 = vld [vmem:[%s4923_s1 + $0x150] sm:$0xff] }
 0x1b7   : > { %3708 = vmatprep.subr.mxu1 %v586_v45 }
 0x1b8   : > { %v3668_v46 = vpop.f32.mrf.mxu1  ;;  %3709 = vmatpush3.msra.mxu1 %v586_v45  ;;  %v3277_v45 = vld [vmem:[%s4923_s1 + $0x148] sm:$0xff] }
 0x1b9   : > { %3710 = vmatprep.subr.mxu1 %v3652_v42 }
 0x1ba   : > { %v678_v47 = vpop.f32.mrf.mxu1  ;;  %3711 = vmatpush3.msra.mxu1 %v3652_v42  ;;  %v3280_v42 = vld [vmem:[%s4923_s1 + $0x160] sm:$0xf] }
 0x1bb   : > { %3712 = vmatprep.subr.mxu1 %v576_v43 }
 0x1bc   : > { %v3671_v48 = vpop.f32.mrf.mxu1  ;;  %3713 = vmatpush3.msra.mxu1 %v576_v43  ;;  %v3279_v43 = vld [vmem:[%s4923_s1 + $0x158] sm:$0xff] }
 0x1bd   : > { %3714 = vmatprep.subr.mxu1 %v3649_v40 }
 0x1be   : > { %v688_v49 = vpop.f32.mrf.mxu1  ;;  %3715 = vmatpush3.msra.mxu1 %v3649_v40  ;;  %v3247_v40 = vld [vmem:[%s4923_s1 + $0x120] sm:$0xff] }
 0x1bf   : > { %3716 = vmatprep.subr.mxu1 %v566_v41 }
 0x1c0   : > { %v3674_v50 = vpop.f32.mrf.mxu1  ;;  %3717 = vmatpush3.msra.mxu1 %v566_v41  ;;  %v3246_v41 = vld [vmem:[%s4923_s1 + $0x118] sm:$0xff] }
 0x1c1   : > { %3718 = vmatprep.subr.mxu1 %v3646_v38 }
 0x1c2   : > { %v698_v51 = vpop.f32.mrf.mxu1  ;;  %3719 = vmatpush3.msra.mxu1 %v3646_v38  ;;  %v3249_v38 = vld [vmem:[%s4923_s1 + $0x130] sm:$0xff] }
 0x1c3   : > { %3720 = vmatprep.subr.mxu1 %v556_v39 }
 0x1c4   : > { %v3677_v54 = vpop.f32.mrf.mxu1  ;;  %3721 = vmatpush3.msra.mxu1 %v556_v39  ;;  %v3248_v39 = vld [vmem:[%s4923_s1 + $0x128] sm:$0xff] }
 0x1c5   : > { %3678 = vmatprep.subr.mxu0 %v3677_v54  ;;  %3723 = vmatmul.mubr.msk.f32.vlgmr.msra.gmra.mxu1 %vm726_vm4, %v596_v52 }
 0x1c6   : > { %v708_v55 = vpop.f32.mrf.mxu1  ;;  %3679 = vmatpush3.msra.mxu0 %v3677_v54  ;;  %3725 = vmatprep.mubr.msk.f32.mxu1 %vm726_vm4, %v597_v53 }
 0x1c7   : > { %3680 = vmatprep.subr.mxu0 %v708_v55 }
 0x1c8   : > { %3681 = vmatpush3.msra.mxu0 %v708_v55 }
 0x1c9   : > { %3682 = vmatprep.subr.mxu0 %v3674_v50  ;;  %3726 = vmatmul.mubr.msk.f32.gmra.mxu1 %vm726_vm4, %v598_v56 }
 0x1ca   : > { %3683 = vmatpush3.msra.mxu0 %v3674_v50  ;;  %3728 = vmatprep.mubr.msk.f32.mxu1 %vm726_vm4, %v599_v57 }
 0x1cb   : > { %3684 = vmatprep.subr.mxu0 %v698_v51 }
 0x1cc   : > { %3685 = vmatpush3.msra.mxu0 %v698_v51 }
 0x1cd   : > { %3686 = vmatprep.subr.mxu0 %v3671_v48  ;;  %3729 = vmatmul.mubr.msk.f32.gmra.mxu1 %vm726_vm4, %v600_v58 }
 0x1ce   : > { %3687 = vmatpush3.msra.mxu0 %v3671_v48  ;;  %3731 = vmatprep.mubr.msk.f32.mxu1 %vm726_vm4, %v601_v59 }
 0x1cf   : > { %3688 = vmatprep.subr.mxu0 %v688_v49 }
 0x1d0   : > { %3689 = vmatpush3.msra.mxu0 %v688_v49 }
 0x1d1   : > { %3690 = vmatprep.subr.mxu0 %v3668_v46  ;;  %3732 = vmatmul.mubr.msk.f32.gmra.mxu1 %vm726_vm4, %v602_v60 }
 0x1d2   : > { %3691 = vmatpush3.msra.mxu0 %v3668_v46  ;;  %v3276_v46 = vld [vmem:[%s4923_s1 + $0x140] sm:$0xff] }
 0x1d3   : > { %3692 = vmatprep.subr.mxu0 %v678_v47 }
 0x1d4   : > { %3693 = vmatpush3.msra.mxu0 %v678_v47  ;;  %v3110_v47 = vld [vmem:[%s4925_s3 + $0x80] sm:$0xff] }
 0x1d5   : > { %3695 = vmatmul.mubr.msk.f32.vlgmr.msra.gmra.mxu0 %vm726_vm4, %v3073_v61  ;;  %3734 = vmatprep.subr.msk.mxu0 %vm486_vm1, %v3100_v62 }
 0x1d6   : > { %3735 = vmatpush3.msk.msra.mxu0 %vm486_vm1, %v3100_v62  ;;  %3697 = vmatprep.mubr.msk.f32.mxu0 %vm726_vm4, %v3074_v63 }
 0x1d7   : > { %3736 = vmatprep.subr.mxu0 %v3099_v0  ;;  %3772 = vmatprep.mubr.msk.f32.mxu1 %vm726_vm4, %v3110_v47 }
 0x1d8   : > { %3737 = vmatpush3.msra.mxu0 %v3099_v0 }
 0x1d9   : > { %3698 = vmatmul.mubr.msk.f32.gmra.mxu0 %vm726_vm4, %v3075_v1  ;;  %3738 = vmatprep.subr.mxu0 %v3098_v2 }
 0x1da   : > { %3700 = vmatprep.mubr.msk.f32.mxu0 %vm726_vm4, %v3076_v3  ;;  %3739 = vmatpush3.msra.mxu0 %v3098_v2 }
 0x1db   : > { %3740 = vmatprep.subr.mxu0 %v3097_v4 }
 0x1dc   : > { %3741 = vmatpush3.msra.mxu0 %v3097_v4 }
 0x1dd   : > { %3701 = vmatmul.mubr.msk.f32.gmra.mxu0 %vm726_vm4, %v3077_v5  ;;  %3742 = vmatprep.subr.mxu0 %v3096_v6 }
 0x1de   : > { %3703 = vmatprep.mubr.msk.f32.mxu0 %vm726_vm4, %v3078_v7  ;;  %3743 = vmatpush3.msra.mxu0 %v3096_v6 }
 0x1df   : > { %3784 = vmatprep.subr.msk.mxu0 %vm486_vm1, %v3130_v8 }
 0x1e1   : > { %3704 = vmatmul.mubr.msk.f32.gmra.mxu0 %vm726_vm4, %v3079_v9 }
 0x1e2   : > { %3744 = vmatprep.mubr.msk.f32.mxu0 %vm461_vm3, %v4240_v25 }
 0x1e5   : > { %3745 = vmatmul.mubr.msk.f32.vlgmr.msra.gmra.mxu0 %vm461_vm3, %v4235_v24 }
 0x1e6   : > { %3747 = vmatprep.mubr.msk.f32.mxu0 %vm461_vm3, %v4261_v29  ;;  %3785 = vmatpush3.msk.msra.mxu0 %vm486_vm1, %v3130_v8 }
 0x1e7   : > { %3786 = vmatprep.subr.mxu0 %v3129_v10 }
 0x1e8   : > { %3787 = vmatpush3.msra.mxu0 %v3129_v10 }
 0x1e9   : > { %3748 = vmatmul.mubr.msk.f32.gmra.mxu0 %vm461_vm3, %v4250_v27  ;;  %3788 = vmatprep.subr.mxu0 %v3128_v11 }
 0x1ea   : > { %3750 = vmatprep.mubr.msk.f32.mxu0 %vm461_vm3, %v4281_v33  ;;  %3789 = vmatpush3.msra.mxu0 %v3128_v11 }
 0x1eb   : > { %3790 = vmatprep.subr.mxu0 %v3127_v12 }
 0x1ec   : > { %3791 = vmatpush3.msra.mxu0 %v3127_v12  ;;  %v3111_v12 = vld [vmem:[%s4925_s3 + $0x88] sm:$0xff] }
 0x1ed   : > { %3751 = vmatmul.mubr.msk.f32.gmra.mxu0 %vm461_vm3, %v4271_v31  ;;  %3792 = vmatprep.subr.mxu0 %v3126_v13 }
 0x1ee   : > { %3753 = vmatprep.mubr.msk.f32.mxu0 %vm461_vm3, %v4295_v35  ;;  %3793 = vmatpush3.msra.mxu0 %v3126_v13  ;;  %v3112_v13 = vld [vmem:[%s4925_s3 + $0x90] sm:$0xff] }
 0x1ef   : > { %3834 = vmatprep.subr.msk.mxu0 %vm486_vm1, %v3160_v14 }
 0x1f1   : > { %3754 = vmatmul.mubr.msk.f32.gmra.mxu0 %vm461_vm3, %v4288_v34 }
 0x1f2   : > { %3794 = vmatprep.mubr.msk.f32.mxu0 %vm461_vm3, %v4240_v25 }
 0x1f5   : > { %3795 = vmatmul.mubr.msk.f32.vlgmr.msra.gmra.mxu0 %vm461_vm3, %v4235_v24 }
 0x1f6   : > { %3797 = vmatprep.mubr.msk.f32.mxu0 %vm461_vm3, %v4261_v29  ;;  %3835 = vmatpush3.msk.msra.mxu0 %vm486_vm1, %v3160_v14 }
 0x1f7   : > { %3836 = vmatprep.subr.mxu0 %v3159_v15 }
 0x1f8   : > { %3837 = vmatpush3.msra.mxu0 %v3159_v15 }
 0x1f9   : > { %3798 = vmatmul.mubr.msk.f32.gmra.mxu0 %vm461_vm3, %v4250_v27  ;;  %3838 = vmatprep.subr.mxu0 %v3158_v16 }
 0x1fa   : > { %3800 = vmatprep.mubr.msk.f32.mxu0 %vm461_vm3, %v4281_v33  ;;  %3839 = vmatpush3.msra.mxu0 %v3158_v16  ;;  %v3113_v16 = vld [vmem:[%s4925_s3 + $0x98] sm:$0xff] }
 0x1fb   : > { %3840 = vmatprep.subr.mxu0 %v3157_v17 }
 0x1fc   : > { %3841 = vmatpush3.msra.mxu0 %v3157_v17  ;;  %v3114_v17 = vld [vmem:[%s4925_s3 + $0xa0] sm:$0xff] }
 0x1fd   : > { %3801 = vmatmul.mubr.msk.f32.gmra.mxu0 %vm461_vm3, %v4271_v31  ;;  %3842 = vmatprep.subr.mxu0 %v3156_v18 }
 0x1fe   : > { %3803 = vmatprep.mubr.msk.f32.mxu0 %vm461_vm3, %v4295_v35  ;;  %3843 = vmatpush3.msra.mxu0 %v3156_v18 }
 0x1ff   : > { %3884 = vmatprep.subr.msk.mxu0 %vm486_vm1, %v3190_v19 }
 0x201   : > { %3804 = vmatmul.mubr.msk.f32.gmra.mxu0 %vm461_vm3, %v4288_v34 }
 0x202   : > { %3844 = vmatprep.mubr.msk.f32.mxu0 %vm461_vm3, %v4240_v25 }
 0x205   : > { %3845 = vmatmul.mubr.msk.f32.vlgmr.msra.gmra.mxu0 %vm461_vm3, %v4235_v24 }
 0x206   : > { %3847 = vmatprep.mubr.msk.f32.mxu0 %vm461_vm3, %v4261_v29  ;;  %3885 = vmatpush3.msk.msra.mxu0 %vm486_vm1, %v3190_v19 }
 0x207   : > { %3886 = vmatprep.subr.mxu0 %v3189_v20 }
 0x208   : > { %3887 = vmatpush3.msra.mxu0 %v3189_v20  ;;  %v3115_v20 = vld [vmem:[%s4925_s3 + $0xa8] sm:$0xff] }
 0x209   : > { %3848 = vmatmul.mubr.msk.f32.gmra.mxu0 %vm461_vm3, %v4250_v27  ;;  %3888 = vmatprep.subr.mxu0 %v3188_v21 }
 0x20a   : > { %3850 = vmatprep.mubr.msk.f32.mxu0 %vm461_vm3, %v4281_v33  ;;  %3889 = vmatpush3.msra.mxu0 %v3188_v21  ;;  %v3116_v21 = vld [vmem:[%s4925_s3 + $0xb0] sm:$0xff] }
 0x20b   : > { %3890 = vmatprep.subr.mxu0 %v3187_v22 }
 0x20c   : > { %3891 = vmatpush3.msra.mxu0 %v3187_v22 }
 0x20d   : > { %3851 = vmatmul.mubr.msk.f32.gmra.mxu0 %vm461_vm3, %v4271_v31  ;;  %3892 = vmatprep.subr.mxu0 %v3186_v23 }
 0x20e   : > { %3853 = vmatprep.mubr.msk.f32.mxu0 %vm461_vm3, %v4295_v35  ;;  %3893 = vmatpush3.msra.mxu0 %v3186_v23 }
 0x20f   : > { %3934 = vmatprep.subr.msk.mxu0 %vm486_vm1, %v3220_v26 }
 0x211   : > { %3854 = vmatmul.mubr.msk.f32.gmra.mxu0 %vm461_vm3, %v4288_v34 }
 0x212   : > { %3894 = vmatprep.mubr.msk.f32.mxu0 %vm461_vm3, %v4240_v25 }
 0x215   : > { %3895 = vmatmul.mubr.msk.f32.vlgmr.msra.gmra.mxu0 %vm461_vm3, %v4235_v24 }
 0x216   : > { %3897 = vmatprep.mubr.msk.f32.mxu0 %vm461_vm3, %v4261_v29  ;;  %3935 = vmatpush3.msk.msra.mxu0 %vm486_vm1, %v3220_v26  ;;  %v3117_v26 = vld [vmem:[%s4925_s3 + $0xb8] sm:$0xff] }
 0x217   : > { %3936 = vmatprep.subr.mxu0 %v3219_v28 }
 0x218   : > { %3937 = vmatpush3.msra.mxu0 %v3219_v28  ;;  %v3140_v28 = vld [vmem:[%s4925_s3 + $0xc0] sm:$0xff] }
 0x219   : > { %3898 = vmatmul.mubr.msk.f32.gmra.mxu0 %vm461_vm3, %v4250_v27  ;;  %3938 = vmatprep.subr.mxu0 %v3218_v30 }
 0x21a   : > { %3900 = vmatprep.mubr.msk.f32.mxu0 %vm461_vm3, %v4281_v33  ;;  %3939 = vmatpush3.msra.mxu0 %v3218_v30 }
 0x21b   : > { %3940 = vmatprep.subr.mxu0 %v3217_v32 }
 0x21c   : > { %3941 = vmatpush3.msra.mxu0 %v3217_v32 }
 0x21d   : > { %3901 = vmatmul.mubr.msk.f32.gmra.mxu0 %vm461_vm3, %v4271_v31  ;;  %3942 = vmatprep.subr.mxu0 %v3216_v36 }
 0x21e   : > { %3903 = vmatprep.mubr.msk.f32.mxu0 %vm461_vm3, %v4295_v35  ;;  %3943 = vmatpush3.msra.mxu0 %v3216_v36  ;;  %v3141_v36 = vld [vmem:[%s4925_s3 + $0xc8] sm:$0xff] }
 0x21f   : > { %3984 = vmatprep.subr.msk.mxu0 %vm486_vm1, %v3250_v37 }
 0x221   : > { %3904 = vmatmul.mubr.msk.f32.gmra.mxu0 %vm461_vm3, %v4288_v34 }
 0x222   : > { %3944 = vmatprep.mubr.msk.f32.mxu0 %vm461_vm3, %v4240_v25 }
 0x225   : > { %3945 = vmatmul.mubr.msk.f32.vlgmr.msra.gmra.mxu0 %vm461_vm3, %v4235_v24 }
 0x226   : > { %3947 = vmatprep.mubr.msk.f32.mxu0 %vm461_vm3, %v4261_v29  ;;  %3985 = vmatpush3.msk.msra.mxu0 %vm486_vm1, %v3250_v37  ;;  %v3142_v37 = vld [vmem:[%s4925_s3 + $0xd0] sm:$0xff] }
 0x227   : > { %3986 = vmatprep.subr.mxu0 %v3249_v38 }
 0x228   : > { %3987 = vmatpush3.msra.mxu0 %v3249_v38 }
 0x229   : > { %3948 = vmatmul.mubr.msk.f32.gmra.mxu0 %vm461_vm3, %v4250_v27  ;;  %3988 = vmatprep.subr.mxu0 %v3248_v39 }
 0x22a   : > { %3950 = vmatprep.mubr.msk.f32.mxu0 %vm461_vm3, %v4281_v33  ;;  %3989 = vmatpush3.msra.mxu0 %v3248_v39 }
 0x22b   : > { %3990 = vmatprep.subr.mxu0 %v3247_v40 }
 0x22c   : > { %3991 = vmatpush3.msra.mxu0 %v3247_v40  ;;  %v3143_v40 = vld [vmem:[%s4925_s3 + $0xd8] sm:$0xff] }
 0x22d   : > { %3951 = vmatmul.mubr.msk.f32.gmra.mxu0 %vm461_vm3, %v4271_v31  ;;  %3992 = vmatprep.subr.mxu0 %v3246_v41 }
 0x22e   : > { %3953 = vmatprep.mubr.msk.f32.mxu0 %vm461_vm3, %v4295_v35  ;;  %3993 = vmatpush3.msra.mxu0 %v3246_v41  ;;  %v3144_v41 = vld [vmem:[%s4925_s3 + $0xe0] sm:$0xff] }
 0x22f   : > { %4034 = vmatprep.subr.msk.mxu0 %vm486_vm1, %v3280_v42 }
 0x231   : > { %3954 = vmatmul.mubr.msk.f32.gmra.mxu0 %vm461_vm3, %v4288_v34 }
 0x232   : > { %3994 = vmatprep.mubr.msk.f32.mxu0 %vm461_vm3, %v4240_v25 }
 0x235   : > { %3995 = vmatmul.mubr.msk.f32.vlgmr.msra.gmra.mxu0 %vm461_vm3, %v4235_v24 }
 0x236   : > { %3997 = vmatprep.mubr.msk.f32.mxu0 %vm461_vm3, %v4261_v29  ;;  %4035 = vmatpush3.msk.msra.mxu0 %vm486_vm1, %v3280_v42 }
 0x237   : > { %4036 = vmatprep.subr.mxu0 %v3279_v43 }
 0x238   : > { %4037 = vmatpush3.msra.mxu0 %v3279_v43 }
 0x239   : > { %3998 = vmatmul.mubr.msk.f32.gmra.mxu0 %vm461_vm3, %v4250_v27  ;;  %4038 = vmatprep.subr.mxu0 %v3278_v44 }
 0x23a   : > { %4000 = vmatprep.mubr.msk.f32.mxu0 %vm461_vm3, %v4281_v33  ;;  %4039 = vmatpush3.msra.mxu0 %v3278_v44  ;;  %v3145_v44 = vld [vmem:[%s4925_s3 + $0xe8] sm:$0xff] }
 0x23b   : > { %4040 = vmatprep.subr.mxu0 %v3277_v45 }
 0x23c   : > { %4041 = vmatpush3.msra.mxu0 %v3277_v45  ;;  %v3146_v45 = vld [vmem:[%s4925_s3 + $0xf0] sm:$0xff] }
 0x23d   : > { %4001 = vmatmul.mubr.msk.f32.gmra.mxu0 %vm461_vm3, %v4271_v31  ;;  %4042 = vmatprep.subr.mxu0 %v3276_v46 }
 0x23e   : > { %4003 = vmatprep.mubr.msk.f32.mxu0 %vm461_vm3, %v4295_v35  ;;  %4043 = vmatpush3.msra.mxu0 %v3276_v46 }
 0x241   : > { %4004 = vmatmul.mubr.msk.f32.gmra.mxu0 %vm461_vm3, %v4288_v34 }
 0x242   : > { %4044 = vmatprep.mubr.msk.f32.mxu0 %vm461_vm3, %v4240_v25 }
 0x245   : > { %4045 = vmatmul.mubr.msk.f32.vlgmr.msra.gmra.mxu0 %vm461_vm3, %v4235_v24 }
 0x246   : > { %4047 = vmatprep.mubr.msk.f32.mxu0 %vm461_vm3, %v4261_v29 }
 0x249   : > { %4048 = vmatmul.mubr.msk.f32.gmra.mxu0 %vm461_vm3, %v4250_v27 }
 0x24a   : > { %4050 = vmatprep.mubr.msk.f32.mxu0 %vm461_vm3, %v4281_v33 }
 0x24d   : > { %4051 = vmatmul.mubr.msk.f32.gmra.mxu0 %vm461_vm3, %v4271_v31 }
 0x24e   : > { %4053 = vmatprep.mubr.msk.f32.mxu0 %vm461_vm3, %v4295_v35 }
 0x251   : > { %4054 = vmatmul.mubr.msk.f32.gmra.mxu0 %vm461_vm3, %v4288_v34 }
 0x285   : > { %v3724_v25 = vpop.f32.mrf.mxu1 }
 0x287   : > { %v946_v24 = vpop.f32.mrf.mxu1 }
 0x289   : > { %v3727_v48 = vpop.f32.mrf.mxu1 }
 0x28b   : > { %v956_v49 = vpop.f32.mrf.mxu1 }
 0x28d   : > { %v3730_v51 = vpop.f32.mrf.mxu1 }
 0x28f   : > { %v966_v54 = vpop.f32.mrf.mxu1 }
 0x291   : > { %v3733_v57 = vpop.f32.mrf.mxu1 }
 0x295   : > { %v3696_v29 = vpop.f32.mrf.mxu0 }
 0x296   : > { %v4619_v50 = vadd.f32 %v3724_v25, %v3696_v29  ;;  %v3147_v25 = vld [vmem:[%s4925_s3 + $0xf8] sm:$0xff]  ;;  %v3171_v29 = vld [vmem:[%s4925_s3 + $0x108] sm:$0xff] }
 0x297   : > { %v817_v27 = vpop.f32.mrf.mxu0 }
 0x298   : > { %v4621_v52 = vadd.f32 %v946_v24, %v817_v27  ;;  %v3170_v24 = vld [vmem:[%s4925_s3 + $0x100] sm:$0xff]  ;;  %v3172_v27 = vld [vmem:[%s4925_s3 + $0x110] sm:$0xff] }
 0x299   : > { %v3699_v33 = vpop.f32.mrf.mxu0 }
 0x29a   : > { %v4623_v53 = vadd.f32 %v3727_v48, %v3699_v33 }
 0x29b   : > { %v827_v31 = vpop.f32.mrf.mxu0 }
 0x29c   : > { %v4625_v35 = vadd.f32 %v956_v49, %v827_v31  ;;  %v3173_v31 = vld [vmem:[%s4925_s3 + $0x118] sm:$0xff] }
 0x29d   : > { %v3702_v55 = vpop.f32.mrf.mxu0 }
 0x29e   : > { %v4627_v34 = vadd.f32 %v3730_v51, %v3702_v55 }
 0x29f   : > { %v837_v56 = vpop.f32.mrf.mxu0 }
 0x2a0   : > { %v4629_v58 = vadd.f32 %v966_v54, %v837_v56  ;;  %v3174_v54 = vld [vmem:[%s4925_s3 + $0x120] sm:$0xff] }
 0x2a1   : > { %v3705_v59 = vpop.f32.mrf.mxu0 }
 0x2a2   : > { %v4631_v60 = vadd.f32 %v3733_v57, %v3705_v59  ;;  %v3175_v57 = vld [vmem:[%s4925_s3 + $0x128] sm:$0xff]  ;;  %v3176_v59 = vld [vmem:[%s4925_s3 + $0x130] sm:$0xff] }
 0x2a3   : > { %v4633_v61 = vpop.f32.mrf.mxu0 }
 0x2a5   : > { %v3746_v62 = vpop.f32.mrf.mxu0 }
 0x2a7   : > { %v1060_v63 = vpop.f32.mrf.mxu0 }
 0x2a9   : > { %v3749_v0 = vpop.f32.mrf.mxu0 }
 0x2ab   : > { %v1070_v1 = vpop.f32.mrf.mxu0 }
 0x2ad   : > { %v3752_v2 = vpop.f32.mrf.mxu0 }
 0x2af   : > { %v1080_v3 = vpop.f32.mrf.mxu0 }
 0x2b1   : > { %v3755_v4 = vpop.f32.mrf.mxu0 }
 0x2b2   : > { %3756 = vmatprep.subr.mxu1 %v3755_v4 }
 0x2b3   : > { %v1090_v5 = vpop.f32.mrf.mxu0  ;;  %3757 = vmatpush3.msra.mxu1 %v3755_v4  ;;  %v3201_v4 = vld [vmem:[%s4925_s3 + $0x148] sm:$0xff] }
 0x2b4   : > { %3758 = vmatprep.subr.mxu1 %v1090_v5 }
 0x2b5   : > { %3759 = vmatpush3.msra.mxu1 %v1090_v5  ;;  %v3796_v6 = vpop.f32.mrf.mxu0  ;;  %v3202_v5 = vld [vmem:[%s4925_s3 + $0x150] sm:$0xff] }
 0x2b6   : > { %3760 = vmatprep.subr.mxu1 %v3752_v2 }
 0x2b7   : > { %3761 = vmatpush3.msra.mxu1 %v3752_v2  ;;  %v1320_v7 = vpop.f32.mrf.mxu0 }
 0x2b8   : > { %3762 = vmatprep.subr.mxu1 %v1080_v3 }
 0x2b9   : > { %3763 = vmatpush3.msra.mxu1 %v1080_v3  ;;  %v3799_v8 = vpop.f32.mrf.mxu0 }
 0x2ba   : > { %3764 = vmatprep.subr.mxu1 %v3749_v0 }
 0x2bb   : > { %3765 = vmatpush3.msra.mxu1 %v3749_v0  ;;  %v1330_v9 = vpop.f32.mrf.mxu0  ;;  %v3177_v0 = vld [vmem:[%s4925_s3 + $0x138] sm:$0xff] }
 0x2bc   : > { %3766 = vmatprep.subr.mxu1 %v1070_v1 }
 0x2bd   : > { %3767 = vmatpush3.msra.mxu1 %v1070_v1  ;;  %v3802_v10 = vpop.f32.mrf.mxu0  ;;  %v3200_v1 = vld [vmem:[%s4925_s3 + $0x140] sm:$0xff] }
 0x2be   : > { %3768 = vmatprep.subr.mxu1 %v3746_v62 }
 0x2bf   : > { %3769 = vmatpush3.msra.mxu1 %v3746_v62  ;;  %v1340_v11 = vpop.f32.mrf.mxu0 }
 0x2c0   : > { %3770 = vmatprep.subr.mxu1 %v1060_v63 }
 0x2c1   : > { %3771 = vmatpush3.msra.mxu1 %v1060_v63  ;;  %v3805_v14 = vpop.f32.mrf.mxu0 }
 0x2c2   : > { %3773 = vmatmul.mubr.msk.f32.vlgmr.msra.gmra.mxu1 %vm726_vm4, %v3111_v12  ;;  %3806 = vmatprep.subr.mxu1 %v3805_v14  ;;  %v3205_v12 = vld [vmem:[%s4925_s3 + $0x168] sm:$0xff] }
 0x2c3   : > { %v1350_v15 = vpop.f32.mrf.mxu0  ;;  %3807 = vmatpush3.msra.mxu1 %v3805_v14  ;;  %3775 = vmatprep.mubr.msk.f32.mxu1 %vm726_vm4, %v3112_v13  ;;  %v3206_v13 = vld [vmem:[%s4925_s3 + $0x170] sm:$0xff] }
 0x2c4   : > { %3808 = vmatprep.subr.mxu1 %v1350_v15 }
 0x2c5   : > { %3809 = vmatpush3.msra.mxu1 %v1350_v15  ;;  %v3846_v18 = vpop.f32.mrf.mxu0 }
 0x2c6   : > { %3776 = vmatmul.mubr.msk.f32.gmra.mxu1 %vm726_vm4, %v3113_v16  ;;  %3810 = vmatprep.subr.mxu1 %v3802_v10  ;;  %v3207_v16 = vld [vmem:[%s4925_s3 + $0x178] sm:$0xff] }
 0x2c7   : > { %3811 = vmatpush3.msra.mxu1 %v3802_v10  ;;  %v4650_v19 = vpop.f32.mrf.mxu0  ;;  %3778 = vmatprep.mubr.msk.f32.mxu1 %vm726_vm4, %v3114_v17  ;;  %v3230_v17 = vld [vmem:[%s4925_s3 + $0x180] sm:$0xff] }
 0x2c8   : > { %3812 = vmatprep.subr.mxu1 %v1340_v11 }
 0x2c9   : > { %3813 = vmatpush3.msra.mxu1 %v1340_v11  ;;  %v3849_v22 = vpop.f32.mrf.mxu0 }
 0x2ca   : > { %3779 = vmatmul.mubr.msk.f32.gmra.mxu1 %vm726_vm4, %v3115_v20  ;;  %3814 = vmatprep.subr.mxu1 %v3799_v8  ;;  %v3231_v20 = vld [vmem:[%s4925_s3 + $0x188] sm:$0xff] }
 0x2cb   : > { %3815 = vmatpush3.msra.mxu1 %v3799_v8  ;;  %v1590_v23 = vpop.f32.mrf.mxu0  ;;  %3781 = vmatprep.mubr.msk.f32.mxu1 %vm726_vm4, %v3116_v21  ;;  %v3203_v8 = vld [vmem:[%s4925_s3 + $0x158] sm:$0xff]  ;;  %v3232_v21 = vld [vmem:[%s4925_s3 + $0x190] sm:$0xff] }
 0x2cc   : > { %3816 = vmatprep.subr.mxu1 %v1330_v9 }
 0x2cd   : > { %3817 = vmatpush3.msra.mxu1 %v1330_v9  ;;  %v3852_v30 = vpop.f32.mrf.mxu0  ;;  %v3204_v9 = vld [vmem:[%s4925_s3 + $0x160] sm:$0xff] }
 0x2ce   : > { %3782 = vmatmul.mubr.msk.f32.gmra.mxu1 %vm726_vm4, %v3117_v26  ;;  %3818 = vmatprep.subr.mxu1 %v3796_v6  ;;  %v3233_v26 = vld [vmem:[%s4925_s3 + $0x198] sm:$0xff] }
 0x2cf   : > { %3819 = vmatpush3.msra.mxu1 %v3796_v6  ;;  %v1600_v32 = vpop.f32.mrf.mxu0  ;;  %3822 = vmatprep.mubr.msk.f32.mxu1 %vm726_vm4, %v3140_v28  ;;  %v3234_v28 = vld [vmem:[%s4925_s3 + $0x1a0] sm:$0xff] }
 0x2d0   : > { %3820 = vmatprep.subr.mxu1 %v1320_v7 }
 0x2d1   : > { %3821 = vmatpush3.msra.mxu1 %v1320_v7  ;;  %v3855_v38 = vpop.f32.mrf.mxu0 }
 0x2d2   : > { %3823 = vmatmul.mubr.msk.f32.vlgmr.msra.gmra.mxu1 %vm726_vm4, %v3141_v36  ;;  %3856 = vmatprep.subr.mxu1 %v3855_v38  ;;  %v3235_v36 = vld [vmem:[%s4925_s3 + $0x1a8] sm:$0xff] }
 0x2d3   : > { %v1610_v39 = vpop.f32.mrf.mxu0  ;;  %3857 = vmatpush3.msra.mxu1 %v3855_v38  ;;  %3825 = vmatprep.mubr.msk.f32.mxu1 %vm726_vm4, %v3142_v37  ;;  %v3236_v37 = vld [vmem:[%s4925_s3 + $0x1b0] sm:$0xff] }
 0x2d4   : > { %3858 = vmatprep.subr.mxu1 %v1610_v39 }
 0x2d5   : > { %3859 = vmatpush3.msra.mxu1 %v1610_v39  ;;  %v3896_v42 = vpop.f32.mrf.mxu0 }
 0x2d6   : > { %3826 = vmatmul.mubr.msk.f32.gmra.mxu1 %vm726_vm4, %v3143_v40  ;;  %3860 = vmatprep.subr.mxu1 %v3852_v30  ;;  %v3237_v40 = vld [vmem:[%s4925_s3 + $0x1b8] sm:$0xff] }
 0x2d7   : > { %3861 = vmatpush3.msra.mxu1 %v3852_v30  ;;  %v4684_v43 = vpop.f32.mrf.mxu0  ;;  %3828 = vmatprep.mubr.msk.f32.mxu1 %vm726_vm4, %v3144_v41  ;;  %v3260_v41 = vld [vmem:[%s4925_s3 + $0x1c0] sm:$0xff] }
 0x2d8   : > { %3862 = vmatprep.subr.mxu1 %v1600_v32 }
 0x2d9   : > { %3863 = vmatpush3.msra.mxu1 %v1600_v32  ;;  %v3899_v46 = vpop.f32.mrf.mxu0 }
 0x2da   : > { %3829 = vmatmul.mubr.msk.f32.gmra.mxu1 %vm726_vm4, %v3145_v44  ;;  %3864 = vmatprep.subr.mxu1 %v3849_v22  ;;  %v3261_v44 = vld [vmem:[%s4925_s3 + $0x1c8] sm:$0xff] }
 0x2db   : > { %3865 = vmatpush3.msra.mxu1 %v3849_v22  ;;  %v1850_v47 = vpop.f32.mrf.mxu0  ;;  %3831 = vmatprep.mubr.msk.f32.mxu1 %vm726_vm4, %v3146_v45  ;;  %v3262_v45 = vld [vmem:[%s4925_s3 + $0x1d0] sm:$0xff] }
 0x2dc   : > { %3866 = vmatprep.subr.mxu1 %v1590_v23 }
 0x2dd   : > { %3867 = vmatpush3.msra.mxu1 %v1590_v23  ;;  %v3902_v48 = vpop.f32.mrf.mxu0 }
 0x2de   : > { %3832 = vmatmul.mubr.msk.f32.gmra.mxu1 %vm726_vm4, %v3147_v25  ;;  %3868 = vmatprep.subr.mxu1 %v3846_v18  ;;  %v3263_v25 = vld [vmem:[%s4925_s3 + $0x1d8] sm:$0xff] }
 0x2df   : > { %3869 = vmatpush3.msra.mxu1 %v3846_v18  ;;  %v1860_v49 = vpop.f32.mrf.mxu0  ;;  %3872 = vmatprep.mubr.msk.f32.mxu1 %vm726_vm4, %v3170_v24  ;;  %v3264_v24 = vld [vmem:[%s4925_s3 + $0x1e0] sm:$0xff] }
 0x2e0   : > { %3870 = vmatprep.subr.mxu1 %v4650_v19 }
 0x2e1   : > { %3871 = vmatpush3.msra.mxu1 %v4650_v19  ;;  %v3905_v51 = vpop.f32.mrf.mxu0 }
 0x2e2   : > { %3873 = vmatmul.mubr.msk.f32.vlgmr.msra.gmra.mxu1 %vm726_vm4, %v3171_v29  ;;  %3906 = vmatprep.subr.mxu1 %v3905_v51  ;;  %v3267_v29 = vld [vmem:[%s4925_s3 + $0x1f8] sm:$0xff] }
 0x2e3   : > { %v1870_v33 = vpop.f32.mrf.mxu0  ;;  %3907 = vmatpush3.msra.mxu1 %v3905_v51  ;;  %3875 = vmatprep.mubr.msk.f32.mxu1 %vm726_vm4, %v3172_v27  ;;  %v3290_v27 = vld [vmem:[%s4925_s3 + $0x200] sm:$0xff]  ;;  %v3291_v51 = vld [vmem:[%s4925_s3 + $0x208] sm:$0xff] }
 0x2e4   : > { %3908 = vmatprep.subr.mxu1 %v1870_v33 }
 0x2e5   : > { %3909 = vmatpush3.msra.mxu1 %v1870_v33  ;;  %v3946_v55 = vpop.f32.mrf.mxu0  ;;  %v3292_v33 = vld [vmem:[%s4925_s3 + $0x210] sm:$0xff] }
 0x2e6   : > { %3876 = vmatmul.mubr.msk.f32.gmra.mxu1 %vm726_vm4, %v3173_v31  ;;  %3910 = vmatprep.subr.mxu1 %v3902_v48  ;;  %v3293_v31 = vld [vmem:[%s4925_s3 + $0x218] sm:$0xff] }
 0x2e7   : > { %3911 = vmatpush3.msra.mxu1 %v3902_v48  ;;  %v4720_v56 = vpop.f32.mrf.mxu0  ;;  %3878 = vmatprep.mubr.msk.f32.mxu1 %vm726_vm4, %v3174_v54  ;;  %v3265_v48 = vld [vmem:[%s4925_s3 + $0x1e8] sm:$0xff]  ;;  %v3294_v54 = vld [vmem:[%s4925_s3 + $0x220] sm:$0xff] }
 0x2e8   : > { %3912 = vmatprep.subr.mxu1 %v1860_v49 }
 0x2e9   : > { %3913 = vmatpush3.msra.mxu1 %v1860_v49  ;;  %v3949_v62 = vpop.f32.mrf.mxu0  ;;  %v3266_v49 = vld [vmem:[%s4925_s3 + $0x1f0] sm:$0xff] }
 0x2ea   : > { %3879 = vmatmul.mubr.msk.f32.gmra.mxu1 %vm726_vm4, %v3175_v57  ;;  %3914 = vmatprep.subr.mxu1 %v3899_v46  ;;  %v3297_v57 = vld [vmem:[%s4925_s3 + $0x238] sm:$0xff] }
 0x2eb   : > { %3915 = vmatpush3.msra.mxu1 %v3899_v46  ;;  %v2110_v63 = vpop.f32.mrf.mxu0  ;;  %3881 = vmatprep.mubr.msk.f32.mxu1 %vm726_vm4, %v3176_v59  ;;  %v2805_v59 = vld [vmem:[%s4926_s4] sm:$0xff] }
 0x2ec   : > { %3916 = vmatprep.subr.mxu1 %v1850_v47  ;;  %4100 = vmatprep.mubr.msk.f32.mxu0 %vm726_vm4, %v2805_v59 }
 0x2ed   : > { %3917 = vmatpush3.msra.mxu1 %v1850_v47  ;;  %v3952_v2 = vpop.f32.mrf.mxu0 }
 0x2ee   : > { %3882 = vmatmul.mubr.msk.f32.gmra.mxu1 %vm726_vm4, %v3177_v0  ;;  %3918 = vmatprep.subr.mxu1 %v3896_v42 }
 0x2ef   : > { %3919 = vmatpush3.msra.mxu1 %v3896_v42  ;;  %v2120_v3 = vpop.f32.mrf.mxu0  ;;  %3922 = vmatprep.mubr.msk.f32.mxu1 %vm726_vm4, %v3200_v1 }
 0x2f0   : > { %3920 = vmatprep.subr.mxu1 %v4684_v43 }
 0x2f1   : > { %3921 = vmatpush3.msra.mxu1 %v4684_v43  ;;  %v3955_v6 = vpop.f32.mrf.mxu0 }
 0x2f2   : > { %3923 = vmatmul.mubr.msk.f32.vlgmr.msra.gmra.mxu1 %vm726_vm4, %v3201_v4  ;;  %3956 = vmatprep.subr.mxu1 %v3955_v6 }
 0x2f3   : > { %v2130_v7 = vpop.f32.mrf.mxu0  ;;  %3957 = vmatpush3.msra.mxu1 %v3955_v6  ;;  %3925 = vmatprep.mubr.msk.f32.mxu1 %vm726_vm4, %v3202_v5 }
 0x2f4   : > { %3958 = vmatprep.subr.mxu1 %v2130_v7 }
 0x2f5   : > { %3959 = vmatpush3.msra.mxu1 %v2130_v7  ;;  %v3996_v10 = vpop.f32.mrf.mxu0 }
 0x2f6   : > { %3926 = vmatmul.mubr.msk.f32.gmra.mxu1 %vm726_vm4, %v3203_v8  ;;  %3960 = vmatprep.subr.mxu1 %v3952_v2 }
 0x2f7   : > { %3961 = vmatpush3.msra.mxu1 %v3952_v2  ;;  %v4756_v11 = vpop.f32.mrf.mxu0  ;;  %3928 = vmatprep.mubr.msk.f32.mxu1 %vm726_vm4, %v3204_v9 }
 0x2f8   : > { %3962 = vmatprep.subr.mxu1 %v2120_v3 }
 0x2f9   : > { %3963 = vmatpush3.msra.mxu1 %v2120_v3  ;;  %v3999_v14 = vpop.f32.mrf.mxu0 }
 0x2fa   : > { %3929 = vmatmul.mubr.msk.f32.gmra.mxu1 %vm726_vm4, %v3205_v12  ;;  %3964 = vmatprep.subr.mxu1 %v3949_v62 }
 0x2fb   : > { %3965 = vmatpush3.msra.mxu1 %v3949_v62  ;;  %v2370_v15 = vpop.f32.mrf.mxu0  ;;  %3931 = vmatprep.mubr.msk.f32.mxu1 %vm726_vm4, %v3206_v13  ;;  %v976_v62 = vpop.f32.mrf.mxu1 }
 0x2fc   : > { %3966 = vmatprep.subr.mxu1 %v2110_v63  ;;  %v977_v12 = vadd.f32 %v976_v62, %v4633_v61 }
 0x2fd   : > { %3967 = vmatpush3.msra.mxu1 %v2110_v63  ;;  %v4002_v18 = vpop.f32.mrf.mxu0 }
 0x2fe   : > { %3932 = vmatmul.mubr.msk.f32.gmra.mxu1 %vm726_vm4, %v3207_v16  ;;  %3968 = vmatprep.subr.mxu1 %v3946_v55 }
 0x2ff   : > { %3969 = vmatpush3.msra.mxu1 %v3946_v55  ;;  %v2380_v19 = vpop.f32.mrf.mxu0  ;;  %3972 = vmatprep.mubr.msk.f32.mxu1 %vm726_vm4, %v3230_v17  ;;  %v3295_v55 = vld [vmem:[%s4925_s3 + $0x228] sm:$0xff] }
 0x300   : > { %3970 = vmatprep.subr.mxu1 %v4720_v56 }
 0x301   : > { %3971 = vmatpush3.msra.mxu1 %v4720_v56  ;;  %v4005_v22 = vpop.f32.mrf.mxu0  ;;  %v3296_v56 = vld [vmem:[%s4925_s3 + $0x230] sm:$0xff] }
 0x302   : > { %3973 = vmatmul.mubr.msk.f32.vlgmr.msra.gmra.mxu1 %vm726_vm4, %v3231_v20  ;;  %4006 = vmatprep.subr.mxu1 %v4005_v22 }
 0x303   : > { %v2390_v23 = vpop.f32.mrf.mxu0  ;;  %4007 = vmatpush3.msra.mxu1 %v4005_v22  ;;  %3975 = vmatprep.mubr.msk.f32.mxu1 %vm726_vm4, %v3232_v21 }
 0x304   : > { %4008 = vmatprep.subr.mxu1 %v2390_v23 }
 0x305   : > { %4009 = vmatpush3.msra.mxu1 %v2390_v23  ;;  %v4046_v30 = vpop.f32.mrf.mxu0 }
 0x306   : > { %3976 = vmatmul.mubr.msk.f32.gmra.mxu1 %vm726_vm4, %v3233_v26  ;;  %4010 = vmatprep.subr.mxu1 %v4002_v18 }
 0x307   : > { %4011 = vmatpush3.msra.mxu1 %v4002_v18  ;;  %v2620_v32 = vpop.f32.mrf.mxu0  ;;  %3978 = vmatprep.mubr.msk.f32.mxu1 %vm726_vm4, %v3234_v28 }
 0x308   : > { %4012 = vmatprep.subr.mxu1 %v2380_v19 }
 0x309   : > { %4013 = vmatpush3.msra.mxu1 %v2380_v19  ;;  %v4049_v38 = vpop.f32.mrf.mxu0 }
 0x30a   : > { %3979 = vmatmul.mubr.msk.f32.gmra.mxu1 %vm726_vm4, %v3235_v36  ;;  %4014 = vmatprep.subr.mxu1 %v3999_v14 }
 0x30b   : > { %4015 = vmatpush3.msra.mxu1 %v3999_v14  ;;  %v2630_v39 = vpop.f32.mrf.mxu0  ;;  %3981 = vmatprep.mubr.msk.f32.mxu1 %vm726_vm4, %v3236_v37 }
 0x30c   : > { %4016 = vmatprep.subr.mxu1 %v2370_v15 }
 0x30d   : > { %4017 = vmatpush3.msra.mxu1 %v2370_v15  ;;  %v4052_v42 = vpop.f32.mrf.mxu0 }
 0x30e   : > { %3982 = vmatmul.mubr.msk.f32.gmra.mxu1 %vm726_vm4, %v3237_v40  ;;  %4018 = vmatprep.subr.mxu1 %v3996_v10 }
 0x30f   : > { %4019 = vmatpush3.msra.mxu1 %v3996_v10  ;;  %v2640_v43 = vpop.f32.mrf.mxu0  ;;  %4022 = vmatprep.mubr.msk.f32.mxu1 %vm726_vm4, %v3260_v41 }
 0x310   : > { %4020 = vmatprep.subr.mxu1 %v4756_v11 }
 0x311   : > { %4021 = vmatpush3.msra.mxu1 %v4756_v11  ;;  %v4055_v46 = vpop.f32.mrf.mxu0 }
 0x312   : > { %4023 = vmatmul.mubr.msk.f32.vlgmr.msra.gmra.mxu1 %vm726_vm4, %v3261_v44  ;;  %4056 = vmatprep.subr.mxu1 %v4055_v46 }
 0x313   : > { %v2650_v47 = vpop.f32.mrf.mxu0  ;;  %4057 = vmatpush3.msra.mxu1 %v4055_v46  ;;  %4025 = vmatprep.mubr.msk.f32.mxu1 %vm726_vm4, %v3262_v45 }
 0x314   : > { %4058 = vmatprep.subr.mxu1 %v2650_v47 }
 0x315   : > { %4059 = vmatpush3.msra.mxu1 %v2650_v47 }
 0x316   : > { %4026 = vmatmul.mubr.msk.f32.gmra.mxu1 %vm726_vm4, %v3263_v25  ;;  %4060 = vmatprep.subr.mxu1 %v4052_v42 }
 0x317   : > { %4061 = vmatpush3.msra.mxu1 %v4052_v42  ;;  %4028 = vmatprep.mubr.msk.f32.mxu1 %vm726_vm4, %v3264_v24 }
 0x318   : > { %4062 = vmatprep.subr.mxu1 %v2640_v43 }
 0x319   : > { %4063 = vmatpush3.msra.mxu1 %v2640_v43 }
 0x31a   : > { %4029 = vmatmul.mubr.msk.f32.gmra.mxu1 %vm726_vm4, %v3265_v48  ;;  %4064 = vmatprep.subr.mxu1 %v4049_v38 }
 0x31b   : > { %4065 = vmatpush3.msra.mxu1 %v4049_v38  ;;  %4031 = vmatprep.mubr.msk.f32.mxu1 %vm726_vm4, %v3266_v49 }
 0x31c   : > { %4066 = vmatprep.subr.mxu1 %v2630_v39 }
 0x31d   : > { %4067 = vmatpush3.msra.mxu1 %v2630_v39 }
 0x31e   : > { %4032 = vmatmul.mubr.msk.f32.gmra.mxu1 %vm726_vm4, %v3267_v29  ;;  %4068 = vmatprep.subr.mxu1 %v4046_v30 }
 0x31f   : > { %4069 = vmatpush3.msra.mxu1 %v4046_v30  ;;  %4072 = vmatprep.mubr.msk.f32.mxu1 %vm726_vm4, %v3290_v27 }
 0x320   : > { %4070 = vmatprep.subr.mxu1 %v2620_v32 }
 0x321   : > { %4071 = vmatpush3.msra.mxu1 %v2620_v32 }
 0x322   : > { %4073 = vmatmul.mubr.msk.f32.vlgmr.msra.gmra.mxu1 %vm726_vm4, %v3291_v51 }
 0x323   : > { %4075 = vmatprep.mubr.msk.f32.mxu1 %vm726_vm4, %v3292_v33 }
 0x326   : > { %4076 = vmatmul.mubr.msk.f32.gmra.mxu1 %vm726_vm4, %v3293_v31 }
 0x327   : > { %4078 = vmatprep.mubr.msk.f32.mxu1 %vm726_vm4, %v3294_v54 }
 0x32a   : > { %4079 = vmatmul.mubr.msk.f32.gmra.mxu1 %vm726_vm4, %v3295_v55 }
 0x32b   : > { %4081 = vmatprep.mubr.msk.f32.mxu1 %vm726_vm4, %v3296_v56 }
 0x32e   : > { %4082 = vmatmul.mubr.msk.f32.gmra.mxu1 %vm726_vm4, %v3297_v57 }
 0x382   : > { %v3774_v63 = vpop.f32.mrf.mxu1 }
 0x383   : > { %v1238_v0 = vadd.f32 %v3774_v63, %v4619_v50 }
 0x384   : > { %v1198_v1 = vpop.f32.mrf.mxu1 }
 0x385   : > { %v1237_v2 = vadd.f32 %v1198_v1, %v4621_v52 }
 0x386   : > { %v3777_v3 = vpop.f32.mrf.mxu1 }
 0x387   : > { %v1240_v4 = vadd.f32 %v3777_v3, %v4623_v53 }
 0x388   : > { %v1208_v5 = vpop.f32.mrf.mxu1 }
 0x389   : > { %v1239_v6 = vadd.f32 %v1208_v5, %v4625_v35 }
 0x38a   : > { %v3780_v7 = vpop.f32.mrf.mxu1 }
 0x38b   : > { %v1242_v8 = vadd.f32 %v3780_v7, %v4627_v34 }
 0x38c   : > { %v1218_v9 = vpop.f32.mrf.mxu1 }
 0x38d   : > { %v1241_v10 = vadd.f32 %v1218_v9, %v4629_v58 }
 0x38e   : > { %v3783_v11 = vpop.f32.mrf.mxu1 }
 0x38f   : > { %v1244_v50 = vadd.f32 %v3783_v11, %v4631_v60 }
 0x390   : > { %v1228_v13 = vpop.f32.mrf.mxu1 }
 0x391   : > { %v1243_v14 = vadd.f32 %v1228_v13, %v977_v12 }
 0x392   : > { %v3824_v52 = vpop.f32.mrf.mxu1 }
 0x393   : > { %v1498_v15 = vadd.f32 %v3824_v52, %v1238_v0 }
 0x394   : > { %v1458_v16 = vpop.f32.mrf.mxu1 }
 0x395   : > { %v1497_v53 = vadd.f32 %v1458_v16, %v1237_v2 }
 0x396   : > { %v3827_v17 = vpop.f32.mrf.mxu1 }
 0x397   : > { %v1500_v18 = vadd.f32 %v3827_v17, %v1240_v4 }
 0x398   : > { %v1468_v35 = vpop.f32.mrf.mxu1 }
 0x399   : > { %v1499_v19 = vadd.f32 %v1468_v35, %v1239_v6 }
 0x39a   : > { %v3830_v20 = vpop.f32.mrf.mxu1 }
 0x39b   : > { %v1502_v34 = vadd.f32 %v3830_v20, %v1242_v8 }
 0x39c   : > { %v1478_v21 = vpop.f32.mrf.mxu1 }
 0x39d   : > { %v1501_v22 = vadd.f32 %v1478_v21, %v1241_v10 }
 0x39e   : > { %v3833_v58 = vpop.f32.mrf.mxu1 }
 0x39f   : > { %v1504_v23 = vadd.f32 %v3833_v58, %v1244_v50 }
 0x3a0   : > { %v1488_v26 = vpop.f32.mrf.mxu1 }
 0x3a1   : > { %v4883_v61 = vadd.f32 %v1488_v26, %v1243_v14 }
 0x3a2   : > { %v3874_v60 = vpop.f32.mrf.mxu1 }
 0x3a3   : > { %v1758_v59 = vadd.f32 %v3874_v60, %v1498_v15 }
 0x3a4   : > { %v1718_v28 = vpop.f32.mrf.mxu1 }
 0x3a5   : > { %v1757_v63 = vadd.f32 %v1718_v28, %v1497_v53 }
 0x3a6   : > { %v3877_v30 = vpop.f32.mrf.mxu1 }
 0x3a7   : > { %v1760_v2 = vadd.f32 %v3877_v30, %v1500_v18 }
 0x3a8   : > { %v1728_v32 = vpop.f32.mrf.mxu1 }
 0x3a9   : > { %v1759_v6 = vadd.f32 %v1728_v32, %v1499_v19 }
 0x3aa   : > { %v3880_v36 = vpop.f32.mrf.mxu1 }
 0x3ab   : > { %v1762_v10 = vadd.f32 %v3880_v36, %v1502_v34 }
 0x3ac   : > { %v1738_v37 = vpop.f32.mrf.mxu1 }
 0x3ad   : > { %v1761_v52 = vadd.f32 %v1738_v37, %v1501_v22 }
 0x3ae   : > { %v3883_v38 = vpop.f32.mrf.mxu1 }
 0x3af   : > { %v1764_v35 = vadd.f32 %v3883_v38, %v1504_v23 }
 0x3b0   : > { %v1748_v39 = vpop.f32.mrf.mxu1 }
 0x3b1   : > { %v1763_v26 = vadd.f32 %v1748_v39, %v4883_v61 }
 0x3b2   : > { %v3924_v40 = vpop.f32.mrf.mxu1 }
 0x3b3   : > { %v2018_v0 = vadd.f32 %v3924_v40, %v1758_v59 }
 0x3b4   : > { %v1978_v41 = vpop.f32.mrf.mxu1 }
 0x3b5   : > { %v2017_v3 = vadd.f32 %v1978_v41, %v1757_v63 }
 0x3b6   : > { %v3927_v42 = vpop.f32.mrf.mxu1 }
 0x3b7   : > { %v2020_v7 = vadd.f32 %v3927_v42, %v1760_v2 }
 0x3b8   : > { %v1988_v43 = vpop.f32.mrf.mxu1 }
 0x3b9   : > { %v2019_v12 = vadd.f32 %v1988_v43, %v1759_v6 }
 0x3ba   : > { %v3930_v44 = vpop.f32.mrf.mxu1 }
 0x3bb   : > { %v2022_v16 = vadd.f32 %v3930_v44, %v1762_v10 }
 0x3bc   : > { %v1998_v45 = vpop.f32.mrf.mxu1 }
 0x3bd   : > { %v2021_v20 = vadd.f32 %v1998_v45, %v1761_v52 }
 0x3be   : > { %v3933_v46 = vpop.f32.mrf.mxu1 }
 0x3bf   : > { %v2024_v60 = vadd.f32 %v3933_v46, %v1764_v35 }
 0x3c0   : > { %v2008_v47 = vpop.f32.mrf.mxu1 }
 0x3c1   : > { %v2023_v36 = vadd.f32 %v2008_v47, %v1763_v26 }
 0x3c2   : > { %v3974_v25 = vpop.f32.mrf.mxu1 }
 0x3c3   : > { %v2278_v4 = vadd.f32 %v3974_v25, %v2018_v0  ;;  %v2806_v25 = vld [vmem:[%s4926_s4 + $0x8] sm:$0xff] }
 0x3c4   : > { %v2238_v24 = vpop.f32.mrf.mxu1 }
 0x3c5   : > { %v2277_v8 = vadd.f32 %v2238_v24, %v2017_v3 }
 0x3c6   : > { %v3977_v48 = vpop.f32.mrf.mxu1 }
 0x3c7   : > { %v2280_v50 = vadd.f32 %v3977_v48, %v2020_v7 }
 0x3c8   : > { %v2248_v49 = vpop.f32.mrf.mxu1 }
 0x3c9   : > { %v2279_v53 = vadd.f32 %v2248_v49, %v2019_v12 }
 0x3ca   : > { %v3980_v29 = vpop.f32.mrf.mxu1 }
 0x3cb   : > { %v2282_v34 = vadd.f32 %v3980_v29, %v2022_v16 }
 0x3cc   : > { %v2258_v27 = vpop.f32.mrf.mxu1 }
 0x3cd   : > { %v2281_v28 = vadd.f32 %v2258_v27, %v2021_v20 }
 0x3ce   : > { %v3983_v51 = vpop.f32.mrf.mxu1 }
 0x3cf   : > { %v2284_v37 = vadd.f32 %v3983_v51, %v2024_v60 }
 0x3d0   : > { %v2268_v33 = vpop.f32.mrf.mxu1 }
 0x3d1   : > { %v2283_v61 = vadd.f32 %v2268_v33, %v2023_v36 }
 0x3d2   : > { %v4024_v31 = vpop.f32.mrf.mxu1 }
 0x3d3   : > { %v2538_v9 = vadd.f32 %v4024_v31, %v2278_v4 }
 0x3d4   : > { %v2498_v54 = vpop.f32.mrf.mxu1 }
 0x3d5   : > { %v2537_v13 = vadd.f32 %v2498_v54, %v2277_v8 }
 0x3d6   : > { %v4027_v55 = vpop.f32.mrf.mxu1 }
 0x3d7   : > { %v2540_v17 = vadd.f32 %v4027_v55, %v2280_v50 }
 0x3d8   : > { %v2508_v56 = vpop.f32.mrf.mxu1 }
 0x3d9   : > { %v2539_v21 = vadd.f32 %v2508_v56, %v2279_v53 }
 0x3da   : > { %v4030_v57 = vpop.f32.mrf.mxu1 }
 0x3db   : > { %v2542_v30 = vadd.f32 %v4030_v57, %v2282_v34 }
 0x3dc   : > { %v2518_v62 = vpop.f32.mrf.mxu1 }
 0x3dd   : > { %v2541_v38 = vadd.f32 %v2518_v62, %v2281_v28 }
 0x3de   : > { %v4033_v1 = vpop.f32.mrf.mxu1 }
 0x3df   : > { %v2544_v39 = vadd.f32 %v4033_v1, %v2284_v37 }
 0x3e0   : > { %v2528_v5 = vpop.f32.mrf.mxu1 }
 0x3e1   : > { %v2543_v44 = vadd.f32 %v2528_v5, %v2283_v61 }
 0x3e2   : > { %v4074_v11 = vpop.f32.mrf.mxu1 }
 0x3e3   : > { %v2798_v14 = vadd.f32 %v4074_v11, %v2538_v9 }
 0x3e4   : > { %v2758_v15 = vpop.f32.mrf.mxu1 }
 0x3e5   : > { %2898 = vst.msk [vmem:[%s4890_s26 + $0x8] sm:$0xff] %vm2896_vm5, %v2798_v14  ;;  %v2797_v18 = vadd.f32 %v2758_v15, %v2537_v13 }
 0x3e6   : > { %v4077_v19 = vpop.f32.mrf.mxu1 }
 0x3e7   : > { %2897 = vst.msk [vmem:[%s4890_s26] sm:$0xff] %vm2896_vm5, %v2797_v18  ;;  %v2800_v58 = vadd.f32 %v4077_v19, %v2540_v17 }
 0x3e8   : > { %v2768_v22 = vpop.f32.mrf.mxu1 }
 0x3e9   : > { %2900 = vst.msk [vmem:[%s4890_s26 + $0x18] sm:$0xff] %vm2896_vm5, %v2800_v58  ;;  %v2799_v32 = vadd.f32 %v2768_v22, %v2539_v21 }
 0x3ea   : > { %v4080_v23 = vpop.f32.mrf.mxu1 }
 0x3eb   : > { %2899 = vst.msk [vmem:[%s4890_s26 + $0x10] sm:$0xff] %vm2896_vm5, %v2799_v32  ;;  %v2802_v40 = vadd.f32 %v4080_v23, %v2542_v30 }
 0x3ec   : > { %v2778_v41 = vpop.f32.mrf.mxu1 }
 0x3ed   : > { %2902 = vst.msk [vmem:[%s4890_s26 + $0x28] sm:$0xff] %vm2896_vm5, %v2802_v40  ;;  %v2801_v42 = vadd.f32 %v2778_v41, %v2541_v38 }
 0x3ee   : > { %v4083_v43 = vpop.f32.mrf.mxu1 }
 0x3ef   : > { %2901 = vst.msk [vmem:[%s4890_s26 + $0x20] sm:$0xff] %vm2896_vm5, %v2801_v42  ;;  %v2804_v45 = vadd.f32 %v4083_v43, %v2544_v39 }
 0x3f0   : > { %v2788_v46 = vpop.f32.mrf.mxu1 }
 0x3f1   : > { %2904 = vst.msk [vmem:[%s4890_s26 + $0x38] sm:$0xff] %vm2896_vm5, %v2804_v45  ;;  %v2803_v47 = vadd.f32 %v2788_v46, %v2543_v44  ;;  %4084 = vmatprep.subr.mxu0 %v2804_v45 }
 0x3f2   : > { %4085 = vmatpush3.msra.mxu0 %v2804_v45 }
 0x3f3   : > { %2903 = vst.msk [vmem:[%s4890_s26 + $0x30] sm:$0xff] %vm2896_vm5, %v2803_v47  ;;  %4086 = vmatprep.subr.mxu0 %v2803_v47 }
 0x3f4   : > { %4087 = vmatpush3.msra.mxu0 %v2803_v47 }
 0x3f5   : > { %4088 = vmatprep.subr.mxu0 %v2802_v40 }
 0x3f6   : > { %4089 = vmatpush3.msra.mxu0 %v2802_v40 }
 0x3f7   : > { %4090 = vmatprep.subr.mxu0 %v2801_v42 }
 0x3f8   : > { %4091 = vmatpush3.msra.mxu0 %v2801_v42 }
 0x3f9   : > { %4092 = vmatprep.subr.mxu0 %v2800_v58 }
 0x3fa   : > { %4093 = vmatpush3.msra.mxu0 %v2800_v58 }
 0x3fb   : > { %4094 = vmatprep.subr.mxu0 %v2799_v32 }
 0x3fc   : > { %4095 = vmatpush3.msra.mxu0 %v2799_v32 }
 0x3fd   : > { %4096 = vmatprep.subr.mxu0 %v2798_v14 }
 0x3fe   : > { %4097 = vmatpush3.msra.mxu0 %v2798_v14 }
 0x3ff   : > { %4098 = vmatprep.subr.mxu0 %v2797_v18 }
 0x400   : > { %4099 = vmatpush3.msra.mxu0 %v2797_v18 }
 0x401   : > { %4101 = vmatmul.mubr.msk.f32.vlgmr.msra.gmra.mxu0 %vm726_vm4, %v2806_v25 }
 0x4c1   : > { %v4102_v24 = vpop.f32.mrf.mxu0 }
 0x4c2   : > { %2906 = vst.msk [vmem:[%s303_s8 + $0x8] sm:$0xff] %vm2896_vm5, %v4102_v24 }
 0x4c3   : > { %v2879_v48 = vpop.f32.mrf.mxu0 }
 0x4c4   : > { %2905 = vst.msk [vmem:[%s303_s8] sm:$0xff] %vm2896_vm5, %v2879_v48 }
 0x4c5 PF: > { %s18_s24 = sadd.s32 1, %s4118_s24  }
 0x4c6   : > { %p15_p4 = scmp.ge.s32.totalorder %s18_s24, 4  }
 0x4c8   :  { %17 = sbr.rel (!%p15_p4) target bundleno = 1 (0x1), region = 110 }

</bundles_post_ra>
